<compile_context>
chip_gen: v6e
topology: v6e:2x2x1
jax: 0.10.0
libtpu: 0.0.40
codegen_flags: <defaults>
</compile_context>

<pallas_src>
import math
from functools import partial

import jax
import jax.numpy as jnp
from jax.experimental import pallas as pl
from jax.experimental.pallas import tpu as pltpu

D_MODEL = 32
N_HEADS = 4
D_FF = 64
EPS = 1e-9          # LayerNormalisation eps (added to std, matches the torch code)
NEG_INF = -1e9


def _vmem_spec():
    # whole array resident in VMEM (shapes here are tiny)
    return pl.BlockSpec(memory_space=pltpu.MemorySpace.VMEM)


# ---------------- traced helpers (plain values, not refs) ----------------
def _softmax_attention(q, k, v, mask_add, B, S_q, S_kv, H, dk):
    """q:(B*S_q,D)  k,v:(B*S_kv,D)  mask_add:(B,S_q,S_kv) additive (0 / -1e9).

    1/sqrt(dk) is already folded into the Q projection by the caller.
    Returns the concatenated head context (B*S_q, D), kept in registers.
    """
    D = H * dk
    q3 = q.reshape(B, S_q, D)
    k3 = k.reshape(B, S_kv, D)
    v3 = v.reshape(B, S_kv, D)
    ctx = []
    for h in range(H):                                  # H=4, static
        qh = q3[:, :, h * dk:(h + 1) * dk]              # (B, S_q, dk)
        kh = k3[:, :, h * dk:(h + 1) * dk]              # (B, S_kv, dk)
        vh = v3[:, :, h * dk:(h + 1) * dk]              # (B, S_kv, dk)
        s = jnp.einsum('bqd,bkd->bqk', qh, kh,
                       preferred_element_type=jnp.float32) + mask_add
        s = s - jnp.max(s, axis=-1, keepdims=True)
        p = jnp.exp(s)
        p = p * pl.reciprocal(jnp.sum(p, axis=-1, keepdims=True), approx=True)
        ctx.append(jnp.einsum('bqk,bkd->bqd', p, vh,
                              preferred_element_type=jnp.float32))
    return jnp.concatenate(ctx, axis=-1).reshape(B * S_q, D)


def _add_norm(x, sub, gamma, beta):
    """Residual add + LayerNormalisation (torch semantics: unbiased std, eps on std)."""
    y = x + sub
    d = y.shape[-1]
    mean = jnp.mean(y, axis=-1, keepdims=True)
    c = y - mean
    var = jnp.sum(c * c, axis=-1, keepdims=True) * (1.0 / (d - 1))
    std = jnp.sqrt(var)
    return gamma * (c * pl.reciprocal(std + EPS, approx=True)) + beta


# ---------------- fused DecoderBlock kernel ----------------
def decoder_block_kernel(
        x_ref, enc_ref, tgt_mask_ref, src_mask_ref,
        sa_wqkv_ref, sa_bqkv_ref, sa_wo_ref, sa_bo_ref,
        ca_wq_ref, ca_bq_ref, ca_wkv_ref, ca_bkv_ref, ca_wo_ref, ca_bo_ref,
        w1_ref, b1_ref, w2_ref, b2_ref,
        g1_ref, be1_ref, g2_ref, be2_ref, g3_ref, be3_ref,
        out_ref, *, B, S, S_enc, H):
    D = x_ref.shape[-1]
    dk = D // H

    x = x_ref[...]                                      # (B*S, D)
    enc = enc_ref[...]                                  # (B*S_enc, D)

    # --- residual_connection1: norm(x + self_attention(x, x, x, tgt_mask)) ---
    qkv = jnp.dot(x, sa_wqkv_ref[...],
                  preferred_element_type=jnp.float32) + sa_bqkv_ref[...]
    ctx = _softmax_attention(qkv[:, :D], qkv[:, D:2 * D], qkv[:, 2 * D:],
                             tgt_mask_ref[...], B, S, S, H, dk)
    sa = jnp.dot(ctx, sa_wo_ref[...],
                 preferred_element_type=jnp.float32) + sa_bo_ref[...]
    x = _add_norm(x, sa, g1_ref[...], be1_ref[...])

    # --- residual_connection2: norm(x + cross_attention(x, enc, enc, src_mask)) ---
    q = jnp.dot(x, ca_wq_ref[...],
                preferred_element_type=jnp.float32) + ca_bq_ref[...]
    kv = jnp.dot(enc, ca_wkv_ref[...],
                 preferred_element_type=jnp.float32) + ca_bkv_ref[...]
    ctx = _softmax_attention(q, kv[:, :D], kv[:, D:],
                             src_mask_ref[...], B, S, S_enc, H, dk)
    ca = jnp.dot(ctx, ca_wo_ref[...],
                 preferred_element_type=jnp.float32) + ca_bo_ref[...]
    x = _add_norm(x, ca, g2_ref[...], be2_ref[...])

    # --- residual_connection3: norm(x + feed_forward(x)) ---
    h = jnp.maximum(jnp.dot(x, w1_ref[...],
                            preferred_element_type=jnp.float32) + b1_ref[...], 0.0)
    ff = jnp.dot(h, w2_ref[...],
                 preferred_element_type=jnp.float32) + b2_ref[...]
    x = _add_norm(x, ff, g3_ref[...], be3_ref[...])

    out_ref[...] = x                                    # single lane-narrow store


# ---------------- wrapper: weight fusion + single pallas_call ----------------
def decoder_block(x, encoder_output, src_mask, tgt_mask, params):
    B, S, D = x.shape
    _, S_enc, _ = encoder_output.shape
    H = N_HEADS
    dk = D // H
    scale = 1.0 / math.sqrt(dk)

    sa, ca, ff = params["self_attn"], params["cross_attn"], params["ff"]

    # fuse Q/K/V projections; fold 1/sqrt(dk) into the Q projection
    sa_wqkv = jnp.concatenate([sa["wq"] * scale, sa["wk"], sa["wv"]], axis=1)
    sa_bqkv = jnp.concatenate([sa["bq"] * scale, sa["bk"], sa["bv"]], axis=1)
    ca_wq = ca["wq"] * scale
    ca_bq = ca["bq"] * scale
    ca_wkv = jnp.concatenate([ca["wk"], ca["wv"]], axis=1)
    ca_bkv = jnp.concatenate([ca["bk"], ca["bv"]], axis=1)

    # additive masks: 0.0 = keep, -1e9 = masked
    tgt_add = jnp.where(tgt_mask > 0, 0.0, NEG_INF).astype(jnp.float32)
    src_add = jnp.where(src_mask > 0, 0.0, NEG_INF).astype(jnp.float32)

    x2 = x.reshape(B * S, D)
    enc2 = encoder_output.reshape(B * S_enc, D)

    args = (x2, enc2, tgt_add, src_add,
            sa_wqkv, sa_bqkv, sa["wo"], sa["bo"],
            ca_wq, ca_bq, ca_wkv, ca_bkv, ca["wo"], ca["bo"],
            ff["w1"], ff["b1"], ff["w2"], ff["b2"],
            params["norm1"]["weight"], params["norm1"]["bias"],
            params["norm2"]["weight"], params["norm2"]["bias"],
            params["norm3"]["weight"], params["norm3"]["bias"])

    out = pl.pallas_call(
        partial(decoder_block_kernel, B=B, S=S, S_enc=S_enc, H=H),
        out_shape=jax.ShapeDtypeStruct((B * S, D), jnp.float32),
        in_specs=[_vmem_spec()] * len(args),
        out_specs=_vmem_spec(),
    )(*args)
    return out.reshape(B, S, D)


# ---------------- deterministic parameter init ----------------
def init_params(key, d_model=D_MODEL, d_ff=D_FF):
    keys = jax.random.split(key, 10)

    def lin(k, fan_in, fan_out):
        w = jax.random.normal(k, (fan_in, fan_out), jnp.float32) * 0.02
        b = jnp.zeros((1, fan_out), jnp.float32)
        return w, b

    def attn_params(k):
        k0, k1, k2, k3 = jax.random.split(k, 4)
        wq, bq = lin(k0, d_model, d_model)
        wk, bk = lin(k1, d_model, d_model)
        wv, bv = lin(k2, d_model, d_model)
        wo, bo = lin(k3, d_model, d_model)
        return dict(wq=wq, bq=bq, wk=wk, bk=bk, wv=wv, bv=bv, wo=wo, bo=bo)

    def norm_params():
        return dict(weight=jnp.ones((1, d_model), jnp.float32),
                    bias=jnp.zeros((1, d_model), jnp.float32))

    w1, b1 = lin(keys[2], d_model, d_ff)
    w2, b2 = lin(keys[3], d_ff, d_model)
    return dict(
        self_attn=attn_params(keys[0]),
        cross_attn=attn_params(keys[1]),
        ff=dict(w1=w1, b1=b1, w2=w2, b2=b2),
        norm1=norm_params(), norm2=norm_params(), norm3=norm_params(),
    )


if __name__ == "__main__":
    B, S, S_ENC = 2, 8, 8
    key = jax.random.PRNGKey(0)
    kx, kenc, kp = jax.random.split(key, 3)

    x = jax.random.normal(kx, (B, S, D_MODEL), jnp.float32)
    encoder_output = jax.random.normal(kenc, (B, S_ENC, D_MODEL), jnp.float32)

    # tgt_mask: causal (B, S, S); src_mask: all-ones (B, S, S_enc); 1.0=keep, 0.0=mask
    tgt_mask = jnp.broadcast_to(
        jnp.tril(jnp.ones((S, S), jnp.float32))[None, :, :], (B, S, S))
    src_mask = jnp.ones((B, S, S_ENC), jnp.float32)

    params = init_params(kp)

    out = decoder_block(x, encoder_output, src_mask, tgt_mask, params)
    out = jax.block_until_ready(out)

    assert out.shape == (B, S, D_MODEL)
    assert bool(jnp.all(jnp.isfinite(out)))
    print("KERNEL_OK")
</pallas_src>

<mosaic_0001>
module attributes {stable_mosaic.version = 11 : i64} {
  func.func @decoder_block_kernel(%arg0: memref<16x32xf32, #tpu.memory_space<vmem>>, %arg1: memref<16x32xf32, #tpu.memory_space<vmem>>, %arg2: memref<2x8x8xf32, #tpu.memory_space<vmem>>, %arg3: memref<2x8x8xf32, #tpu.memory_space<vmem>>, %arg4: memref<32x96xf32, #tpu.memory_space<vmem>>, %arg5: memref<1x96xf32, #tpu.memory_space<vmem>>, %arg6: memref<32x32xf32, #tpu.memory_space<vmem>>, %arg7: memref<1x32xf32, #tpu.memory_space<vmem>>, %arg8: memref<32x32xf32, #tpu.memory_space<vmem>>, %arg9: memref<1x32xf32, #tpu.memory_space<vmem>>, %arg10: memref<32x64xf32, #tpu.memory_space<vmem>>, %arg11: memref<1x64xf32, #tpu.memory_space<vmem>>, %arg12: memref<32x32xf32, #tpu.memory_space<vmem>>, %arg13: memref<1x32xf32, #tpu.memory_space<vmem>>, %arg14: memref<32x64xf32, #tpu.memory_space<vmem>>, %arg15: memref<1x64xf32, #tpu.memory_space<vmem>>, %arg16: memref<64x32xf32, #tpu.memory_space<vmem>>, %arg17: memref<1x32xf32, #tpu.memory_space<vmem>>, %arg18: memref<1x32xf32, #tpu.memory_space<vmem>>, %arg19: memref<1x32xf32, #tpu.memory_space<vmem>>, %arg20: memref<1x32xf32, #tpu.memory_space<vmem>>, %arg21: memref<1x32xf32, #tpu.memory_space<vmem>>, %arg22: memref<1x32xf32, #tpu.memory_space<vmem>>, %arg23: memref<1x32xf32, #tpu.memory_space<vmem>>, %arg24: memref<16x32xf32, #tpu.memory_space<vmem>>) attributes {dimension_semantics = [], scalar_prefetch = 0 : i64, scratch_operands = 0 : i64, tpu.core_type = #tpu.core_type<tc>} {
    %c0 = arith.constant 0 : index
    %c0_0 = arith.constant 0 : index
    %0 = vector.load %arg0[%c0, %c0_0] : memref<16x32xf32, #tpu.memory_space<vmem>>, vector<16x32xf32>
    %c0_1 = arith.constant 0 : index
    %c0_2 = arith.constant 0 : index
    %1 = vector.load %arg1[%c0_1, %c0_2] : memref<16x32xf32, #tpu.memory_space<vmem>>, vector<16x32xf32>
    %c0_3 = arith.constant 0 : index
    %c0_4 = arith.constant 0 : index
    %2 = vector.load %arg4[%c0_3, %c0_4] : memref<32x96xf32, #tpu.memory_space<vmem>>, vector<32x96xf32>
    %cst = arith.constant dense<0.000000e+00> : vector<16x96xf32>
    %3 = tpu.matmul %0, %2, %cst {dimension_numbers = #tpu.dot_dimension_numbers<[1], [0], [0], [1], [0, 0, 1, 1], [], []>} : vector<16x32xf32>, vector<32x96xf32>, vector<16x96xf32> -> vector<16x96xf32>
    %c0_5 = arith.constant 0 : index
    %c0_6 = arith.constant 0 : index
    %4 = vector.load %arg5[%c0_5, %c0_6] : memref<1x96xf32, #tpu.memory_space<vmem>>, vector<1x96xf32>
    %5 = vector.broadcast %4 : vector<1x96xf32> to vector<16x96xf32>
    %6 = arith.addf %3, %5 : vector<16x96xf32>
    %7 = vector.extract_strided_slice %6 {offsets = [0, 0], sizes = [16, 32], strides = [1, 1]} : vector<16x96xf32> to vector<16x32xf32>
    %8 = vector.extract_strided_slice %6 {offsets = [0, 32], sizes = [16, 32], strides = [1, 1]} : vector<16x96xf32> to vector<16x32xf32>
    %9 = vector.extract_strided_slice %6 {offsets = [0, 64], sizes = [16, 32], strides = [1, 1]} : vector<16x96xf32> to vector<16x32xf32>
    %c0_7 = arith.constant 0 : index
    %c0_8 = arith.constant 0 : index
    %c0_9 = arith.constant 0 : index
    %10 = vector.load %arg2[%c0_7, %c0_8, %c0_9] : memref<2x8x8xf32, #tpu.memory_space<vmem>>, vector<2x8x8xf32>
    %11 = vector.shape_cast %7 : vector<16x32xf32> to vector<2x8x32xf32>
    %12 = vector.shape_cast %8 : vector<16x32xf32> to vector<2x8x32xf32>
    %13 = vector.shape_cast %9 : vector<16x32xf32> to vector<2x8x32xf32>
    %14 = vector.extract_strided_slice %11 {offsets = [0, 0, 0], sizes = [2, 8, 8], strides = [1, 1, 1]} : vector<2x8x32xf32> to vector<2x8x8xf32>
    %15 = vector.extract_strided_slice %12 {offsets = [0, 0, 0], sizes = [2, 8, 8], strides = [1, 1, 1]} : vector<2x8x32xf32> to vector<2x8x8xf32>
    %16 = vector.extract_strided_slice %13 {offsets = [0, 0, 0], sizes = [2, 8, 8], strides = [1, 1, 1]} : vector<2x8x32xf32> to vector<2x8x8xf32>
    "tpu.trace_start"() <{level = 10 : i32, message = "bqd,bkd->bqk"}> : () -> ()
    %cst_10 = arith.constant dense<0.000000e+00> : vector<2x8x8xf32>
    %17 = tpu.matmul %14, %15, %cst_10 {dimension_numbers = #tpu.dot_dimension_numbers<[2], [2], [1], [1], [0, 0, 0, 1, 1, 1], [0], [0]>} : vector<2x8x8xf32>, vector<2x8x8xf32>, vector<2x8x8xf32> -> vector<2x8x8xf32>
    "tpu.trace_stop"() : () -> ()
    %18 = arith.addf %17, %10 : vector<2x8x8xf32>
    %cst_11 = arith.constant dense<0xFF800000> : vector<2x8xf32>
    %19 = vector.multi_reduction <maximumf>, %18, %cst_11 [2] : vector<2x8x8xf32> to vector<2x8xf32>
    %20 = vector.shape_cast %19 : vector<2x8xf32> to vector<2x8x1xf32>
    %21 = vector.broadcast %20 : vector<2x8x1xf32> to vector<2x8x8xf32>
    %22 = arith.subf %18, %21 : vector<2x8x8xf32>
    %23 = math.exp %22 : vector<2x8x8xf32>
    %cst_12 = arith.constant dense<0.000000e+00> : vector<2x8xf32>
    %24 = vector.multi_reduction <add>, %23, %cst_12 [2] : vector<2x8x8xf32> to vector<2x8xf32>
    %25 = vector.shape_cast %24 : vector<2x8xf32> to vector<2x8x1xf32>
    %26 = tpu.reciprocal %25 {approx = true} : vector<2x8x1xf32> -> vector<2x8x1xf32>
    %27 = vector.broadcast %26 : vector<2x8x1xf32> to vector<2x8x8xf32>
    %28 = arith.mulf %23, %27 : vector<2x8x8xf32>
    "tpu.trace_start"() <{level = 10 : i32, message = "bqk,bkd->bqd"}> : () -> ()
    %cst_13 = arith.constant dense<0.000000e+00> : vector<2x8x8xf32>
    %29 = tpu.matmul %28, %16, %cst_13 {dimension_numbers = #tpu.dot_dimension_numbers<[2], [1], [1], [2], [0, 0, 0, 1, 1, 2], [0], [0]>} : vector<2x8x8xf32>, vector<2x8x8xf32>, vector<2x8x8xf32> -> vector<2x8x8xf32>
    "tpu.trace_stop"() : () -> ()
    %30 = vector.extract_strided_slice %11 {offsets = [0, 0, 8], sizes = [2, 8, 8], strides = [1, 1, 1]} : vector<2x8x32xf32> to vector<2x8x8xf32>
    %31 = vector.extract_strided_slice %12 {offsets = [0, 0, 8], sizes = [2, 8, 8], strides = [1, 1, 1]} : vector<2x8x32xf32> to vector<2x8x8xf32>
    %32 = vector.extract_strided_slice %13 {offsets = [0, 0, 8], sizes = [2, 8, 8], strides = [1, 1, 1]} : vector<2x8x32xf32> to vector<2x8x8xf32>
    "tpu.trace_start"() <{level = 10 : i32, message = "bqd,bkd->bqk"}> : () -> ()
    %cst_14 = arith.constant dense<0.000000e+00> : vector<2x8x8xf32>
    %33 = tpu.matmul %30, %31, %cst_14 {dimension_numbers = #tpu.dot_dimension_numbers<[2], [2], [1], [1], [0, 0, 0, 1, 1, 1], [0], [0]>} : vector<2x8x8xf32>, vector<2x8x8xf32>, vector<2x8x8xf32> -> vector<2x8x8xf32>
    "tpu.trace_stop"() : () -> ()
    %34 = arith.addf %33, %10 : vector<2x8x8xf32>
    %cst_15 = arith.constant dense<0xFF800000> : vector<2x8xf32>
    %35 = vector.multi_reduction <maximumf>, %34, %cst_15 [2] : vector<2x8x8xf32> to vector<2x8xf32>
    %36 = vector.shape_cast %35 : vector<2x8xf32> to vector<2x8x1xf32>
    %37 = vector.broadcast %36 : vector<2x8x1xf32> to vector<2x8x8xf32>
    %38 = arith.subf %34, %37 : vector<2x8x8xf32>
    %39 = math.exp %38 : vector<2x8x8xf32>
    %cst_16 = arith.constant dense<0.000000e+00> : vector<2x8xf32>
    %40 = vector.multi_reduction <add>, %39, %cst_16 [2] : vector<2x8x8xf32> to vector<2x8xf32>
    %41 = vector.shape_cast %40 : vector<2x8xf32> to vector<2x8x1xf32>
    %42 = tpu.reciprocal %41 {approx = true} : vector<2x8x1xf32> -> vector<2x8x1xf32>
    %43 = vector.broadcast %42 : vector<2x8x1xf32> to vector<2x8x8xf32>
    %44 = arith.mulf %39, %43 : vector<2x8x8xf32>
    "tpu.trace_start"() <{level = 10 : i32, message = "bqk,bkd->bqd"}> : () -> ()
    %cst_17 = arith.constant dense<0.000000e+00> : vector<2x8x8xf32>
    %45 = tpu.matmul %44, %32, %cst_17 {dimension_numbers = #tpu.dot_dimension_numbers<[2], [1], [1], [2], [0, 0, 0, 1, 1, 2], [0], [0]>} : vector<2x8x8xf32>, vector<2x8x8xf32>, vector<2x8x8xf32> -> vector<2x8x8xf32>
    "tpu.trace_stop"() : () -> ()
    %46 = vector.extract_strided_slice %11 {offsets = [0, 0, 16], sizes = [2, 8, 8], strides = [1, 1, 1]} : vector<2x8x32xf32> to vector<2x8x8xf32>
    %47 = vector.extract_strided_slice %12 {offsets = [0, 0, 16], sizes = [2, 8, 8], strides = [1, 1, 1]} : vector<2x8x32xf32> to vector<2x8x8xf32>
    %48 = vector.extract_strided_slice %13 {offsets = [0, 0, 16], sizes = [2, 8, 8], strides = [1, 1, 1]} : vector<2x8x32xf32> to vector<2x8x8xf32>
    "tpu.trace_start"() <{level = 10 : i32, message = "bqd,bkd->bqk"}> : () -> ()
    %cst_18 = arith.constant dense<0.000000e+00> : vector<2x8x8xf32>
    %49 = tpu.matmul %46, %47, %cst_18 {dimension_numbers = #tpu.dot_dimension_numbers<[2], [2], [1], [1], [0, 0, 0, 1, 1, 1], [0], [0]>} : vector<2x8x8xf32>, vector<2x8x8xf32>, vector<2x8x8xf32> -> vector<2x8x8xf32>
    "tpu.trace_stop"() : () -> ()
    %50 = arith.addf %49, %10 : vector<2x8x8xf32>
    %cst_19 = arith.constant dense<0xFF800000> : vector<2x8xf32>
    %51 = vector.multi_reduction <maximumf>, %50, %cst_19 [2] : vector<2x8x8xf32> to vector<2x8xf32>
    %52 = vector.shape_cast %51 : vector<2x8xf32> to vector<2x8x1xf32>
    %53 = vector.broadcast %52 : vector<2x8x1xf32> to vector<2x8x8xf32>
    %54 = arith.subf %50, %53 : vector<2x8x8xf32>
    %55 = math.exp %54 : vector<2x8x8xf32>
    %cst_20 = arith.constant dense<0.000000e+00> : vector<2x8xf32>
    %56 = vector.multi_reduction <add>, %55, %cst_20 [2] : vector<2x8x8xf32> to vector<2x8xf32>
    %57 = vector.shape_cast %56 : vector<2x8xf32> to vector<2x8x1xf32>
    %58 = tpu.reciprocal %57 {approx = true} : vector<2x8x1xf32> -> vector<2x8x1xf32>
    %59 = vector.broadcast %58 : vector<2x8x1xf32> to vector<2x8x8xf32>
    %60 = arith.mulf %55, %59 : vector<2x8x8xf32>
    "tpu.trace_start"() <{level = 10 : i32, message = "bqk,bkd->bqd"}> : () -> ()
    %cst_21 = arith.constant dense<0.000000e+00> : vector<2x8x8xf32>
    %61 = tpu.matmul %60, %48, %cst_21 {dimension_numbers = #tpu.dot_dimension_numbers<[2], [1], [1], [2], [0, 0, 0, 1, 1, 2], [0], [0]>} : vector<2x8x8xf32>, vector<2x8x8xf32>, vector<2x8x8xf32> -> vector<2x8x8xf32>
    "tpu.trace_stop"() : () -> ()
    %62 = vector.extract_strided_slice %11 {offsets = [0, 0, 24], sizes = [2, 8, 8], strides = [1, 1, 1]} : vector<2x8x32xf32> to vector<2x8x8xf32>
    %63 = vector.extract_strided_slice %12 {offsets = [0, 0, 24], sizes = [2, 8, 8], strides = [1, 1, 1]} : vector<2x8x32xf32> to vector<2x8x8xf32>
    %64 = vector.extract_strided_slice %13 {offsets = [0, 0, 24], sizes = [2, 8, 8], strides = [1, 1, 1]} : vector<2x8x32xf32> to vector<2x8x8xf32>
    "tpu.trace_start"() <{level = 10 : i32, message = "bqd,bkd->bqk"}> : () -> ()
    %cst_22 = arith.constant dense<0.000000e+00> : vector<2x8x8xf32>
    %65 = tpu.matmul %62, %63, %cst_22 {dimension_numbers = #tpu.dot_dimension_numbers<[2], [2], [1], [1], [0, 0, 0, 1, 1, 1], [0], [0]>} : vector<2x8x8xf32>, vector<2x8x8xf32>, vector<2x8x8xf32> -> vector<2x8x8xf32>
    "tpu.trace_stop"() : () -> ()
    %66 = arith.addf %65, %10 : vector<2x8x8xf32>
    %cst_23 = arith.constant dense<0xFF800000> : vector<2x8xf32>
    %67 = vector.multi_reduction <maximumf>, %66, %cst_23 [2] : vector<2x8x8xf32> to vector<2x8xf32>
    %68 = vector.shape_cast %67 : vector<2x8xf32> to vector<2x8x1xf32>
    %69 = vector.broadcast %68 : vector<2x8x1xf32> to vector<2x8x8xf32>
    %70 = arith.subf %66, %69 : vector<2x8x8xf32>
    %71 = math.exp %70 : vector<2x8x8xf32>
    %cst_24 = arith.constant dense<0.000000e+00> : vector<2x8xf32>
    %72 = vector.multi_reduction <add>, %71, %cst_24 [2] : vector<2x8x8xf32> to vector<2x8xf32>
    %73 = vector.shape_cast %72 : vector<2x8xf32> to vector<2x8x1xf32>
    %74 = tpu.reciprocal %73 {approx = true} : vector<2x8x1xf32> -> vector<2x8x1xf32>
    %75 = vector.broadcast %74 : vector<2x8x1xf32> to vector<2x8x8xf32>
    %76 = arith.mulf %71, %75 : vector<2x8x8xf32>
    "tpu.trace_start"() <{level = 10 : i32, message = "bqk,bkd->bqd"}> : () -> ()
    %cst_25 = arith.constant dense<0.000000e+00> : vector<2x8x8xf32>
    %77 = tpu.matmul %76, %64, %cst_25 {dimension_numbers = #tpu.dot_dimension_numbers<[2], [1], [1], [2], [0, 0, 0, 1, 1, 2], [0], [0]>} : vector<2x8x8xf32>, vector<2x8x8xf32>, vector<2x8x8xf32> -> vector<2x8x8xf32>
    "tpu.trace_stop"() : () -> ()
    %78 = tpu.concatenate %29, %45, %61, %77 in 2 : vector<2x8x8xf32>, vector<2x8x8xf32>, vector<2x8x8xf32>, vector<2x8x8xf32> -> vector<2x8x32xf32>
    %79 = vector.shape_cast %78 : vector<2x8x32xf32> to vector<16x32xf32>
    %c0_26 = arith.constant 0 : index
    %c0_27 = arith.constant 0 : index
    %80 = vector.load %arg6[%c0_26, %c0_27] : memref<32x32xf32, #tpu.memory_space<vmem>>, vector<32x32xf32>
    %cst_28 = arith.constant dense<0.000000e+00> : vector<16x32xf32>
    %81 = tpu.matmul %79, %80, %cst_28 {dimension_numbers = #tpu.dot_dimension_numbers<[1], [0], [0], [1], [0, 0, 1, 1], [], []>} : vector<16x32xf32>, vector<32x32xf32>, vector<16x32xf32> -> vector<16x32xf32>
    %c0_29 = arith.constant 0 : index
    %c0_30 = arith.constant 0 : index
    %82 = vector.load %arg7[%c0_29, %c0_30] : memref<1x32xf32, #tpu.memory_space<vmem>>, vector<1x32xf32>
    %83 = vector.broadcast %82 : vector<1x32xf32> to vector<16x32xf32>
    %84 = arith.addf %81, %83 : vector<16x32xf32>
    %c0_31 = arith.constant 0 : index
    %c0_32 = arith.constant 0 : index
    %85 = vector.load %arg18[%c0_31, %c0_32] : memref<1x32xf32, #tpu.memory_space<vmem>>, vector<1x32xf32>
    %c0_33 = arith.constant 0 : index
    %c0_34 = arith.constant 0 : index
    %86 = vector.load %arg19[%c0_33, %c0_34] : memref<1x32xf32, #tpu.memory_space<vmem>>, vector<1x32xf32>
    %87 = arith.addf %0, %84 : vector<16x32xf32>
    %cst_35 = arith.constant dense<0.000000e+00> : vector<16xf32>
    %88 = vector.multi_reduction <add>, %87, %cst_35 [1] : vector<16x32xf32> to vector<16xf32>
    %89 = vector.shape_cast %88 : vector<16xf32> to vector<16x1xf32>
    %cst_36 = arith.constant 3.200000e+01 : f32
    %90 = vector.broadcast %cst_36 : f32 to vector<16x1xf32>
    %91 = arith.divf %89, %90 : vector<16x1xf32>
    %92 = vector.broadcast %91 : vector<16x1xf32> to vector<16x32xf32>
    %93 = arith.subf %87, %92 : vector<16x32xf32>
    %94 = arith.mulf %93, %93 : vector<16x32xf32>
    %cst_37 = arith.constant dense<0.000000e+00> : vector<16xf32>
    %95 = vector.multi_reduction <add>, %94, %cst_37 [1] : vector<16x32xf32> to vector<16xf32>
    %96 = vector.shape_cast %95 : vector<16xf32> to vector<16x1xf32>
    %cst_38 = arith.constant 0.0322580636 : f32
    %97 = vector.broadcast %cst_38 : f32 to vector<16x1xf32>
    %98 = arith.mulf %96, %97 : vector<16x1xf32>
    %99 = math.sqrt %98 : vector<16x1xf32>
    %cst_39 = arith.constant 9.99999971E-10 : f32
    %100 = vector.broadcast %cst_39 : f32 to vector<16x1xf32>
    %101 = arith.addf %99, %100 : vector<16x1xf32>
    %102 = tpu.reciprocal %101 {approx = true} : vector<16x1xf32> -> vector<16x1xf32>
    %103 = vector.broadcast %102 : vector<16x1xf32> to vector<16x32xf32>
    %104 = arith.mulf %93, %103 : vector<16x32xf32>
    %105 = vector.broadcast %85 : vector<1x32xf32> to vector<16x32xf32>
    %106 = arith.mulf %105, %104 : vector<16x32xf32>
    %107 = vector.broadcast %86 : vector<1x32xf32> to vector<16x32xf32>
    %108 = arith.addf %106, %107 : vector<16x32xf32>
    %c0_40 = arith.constant 0 : index
    %c0_41 = arith.constant 0 : index
    %109 = vector.load %arg8[%c0_40, %c0_41] : memref<32x32xf32, #tpu.memory_space<vmem>>, vector<32x32xf32>
    %cst_42 = arith.constant dense<0.000000e+00> : vector<16x32xf32>
    %110 = tpu.matmul %108, %109, %cst_42 {dimension_numbers = #tpu.dot_dimension_numbers<[1], [0], [0], [1], [0, 0, 1, 1], [], []>} : vector<16x32xf32>, vector<32x32xf32>, vector<16x32xf32> -> vector<16x32xf32>
    %c0_43 = arith.constant 0 : index
    %c0_44 = arith.constant 0 : index
    %111 = vector.load %arg9[%c0_43, %c0_44] : memref<1x32xf32, #tpu.memory_space<vmem>>, vector<1x32xf32>
    %112 = vector.broadcast %111 : vector<1x32xf32> to vector<16x32xf32>
    %113 = arith.addf %110, %112 : vector<16x32xf32>
    %c0_45 = arith.constant 0 : index
    %c0_46 = arith.constant 0 : index
    %114 = vector.load %arg10[%c0_45, %c0_46] : memref<32x64xf32, #tpu.memory_space<vmem>>, vector<32x64xf32>
    %cst_47 = arith.constant dense<0.000000e+00> : vector<16x64xf32>
    %115 = tpu.matmul %1, %114, %cst_47 {dimension_numbers = #tpu.dot_dimension_numbers<[1], [0], [0], [1], [0, 0, 1, 1], [], []>} : vector<16x32xf32>, vector<32x64xf32>, vector<16x64xf32> -> vector<16x64xf32>
    %c0_48 = arith.constant 0 : index
    %c0_49 = arith.constant 0 : index
    %116 = vector.load %arg11[%c0_48, %c0_49] : memref<1x64xf32, #tpu.memory_space<vmem>>, vector<1x64xf32>
    %117 = vector.broadcast %116 : vector<1x64xf32> to vector<16x64xf32>
    %118 = arith.addf %115, %117 : vector<16x64xf32>
    %119 = vector.extract_strided_slice %118 {offsets = [0, 0], sizes = [16, 32], strides = [1, 1]} : vector<16x64xf32> to vector<16x32xf32>
    %120 = vector.extract_strided_slice %118 {offsets = [0, 32], sizes = [16, 32], strides = [1, 1]} : vector<16x64xf32> to vector<16x32xf32>
    %c0_50 = arith.constant 0 : index
    %c0_51 = arith.constant 0 : index
    %c0_52 = arith.constant 0 : index
    %121 = vector.load %arg3[%c0_50, %c0_51, %c0_52] : memref<2x8x8xf32, #tpu.memory_space<vmem>>, vector<2x8x8xf32>
    %122 = vector.shape_cast %113 : vector<16x32xf32> to vector<2x8x32xf32>
    %123 = vector.shape_cast %119 : vector<16x32xf32> to vector<2x8x32xf32>
    %124 = vector.shape_cast %120 : vector<16x32xf32> to vector<2x8x32xf32>
    %125 = vector.extract_strided_slice %122 {offsets = [0, 0, 0], sizes = [2, 8, 8], strides = [1, 1, 1]} : vector<2x8x32xf32> to vector<2x8x8xf32>
    %126 = vector.extract_strided_slice %123 {offsets = [0, 0, 0], sizes = [2, 8, 8], strides = [1, 1, 1]} : vector<2x8x32xf32> to vector<2x8x8xf32>
    %127 = vector.extract_strided_slice %124 {offsets = [0, 0, 0], sizes = [2, 8, 8], strides = [1, 1, 1]} : vector<2x8x32xf32> to vector<2x8x8xf32>
    "tpu.trace_start"() <{level = 10 : i32, message = "bqd,bkd->bqk"}> : () -> ()
    %cst_53 = arith.constant dense<0.000000e+00> : vector<2x8x8xf32>
    %128 = tpu.matmul %125, %126, %cst_53 {dimension_numbers = #tpu.dot_dimension_numbers<[2], [2], [1], [1], [0, 0, 0, 1, 1, 1], [0], [0]>} : vector<2x8x8xf32>, vector<2x8x8xf32>, vector<2x8x8xf32> -> vector<2x8x8xf32>
    "tpu.trace_stop"() : () -> ()
    %129 = arith.addf %128, %121 : vector<2x8x8xf32>
    %cst_54 = arith.constant dense<0xFF800000> : vector<2x8xf32>
    %130 = vector.multi_reduction <maximumf>, %129, %cst_54 [2] : vector<2x8x8xf32> to vector<2x8xf32>
    %131 = vector.shape_cast %130 : vector<2x8xf32> to vector<2x8x1xf32>
    %132 = vector.broadcast %131 : vector<2x8x1xf32> to vector<2x8x8xf32>
    %133 = arith.subf %129, %132 : vector<2x8x8xf32>
    %134 = math.exp %133 : vector<2x8x8xf32>
    %cst_55 = arith.constant dense<0.000000e+00> : vector<2x8xf32>
    %135 = vector.multi_reduction <add>, %134, %cst_55 [2] : vector<2x8x8xf32> to vector<2x8xf32>
    %136 = vector.shape_cast %135 : vector<2x8xf32> to vector<2x8x1xf32>
    %137 = tpu.reciprocal %136 {approx = true} : vector<2x8x1xf32> -> vector<2x8x1xf32>
    %138 = vector.broadcast %137 : vector<2x8x1xf32> to vector<2x8x8xf32>
    %139 = arith.mulf %134, %138 : vector<2x8x8xf32>
    "tpu.trace_start"() <{level = 10 : i32, message = "bqk,bkd->bqd"}> : () -> ()
    %cst_56 = arith.constant dense<0.000000e+00> : vector<2x8x8xf32>
    %140 = tpu.matmul %139, %127, %cst_56 {dimension_numbers = #tpu.dot_dimension_numbers<[2], [1], [1], [2], [0, 0, 0, 1, 1, 2], [0], [0]>} : vector<2x8x8xf32>, vector<2x8x8xf32>, vector<2x8x8xf32> -> vector<2x8x8xf32>
    "tpu.trace_stop"() : () -> ()
    %141 = vector.extract_strided_slice %122 {offsets = [0, 0, 8], sizes = [2, 8, 8], strides = [1, 1, 1]} : vector<2x8x32xf32> to vector<2x8x8xf32>
    %142 = vector.extract_strided_slice %123 {offsets = [0, 0, 8], sizes = [2, 8, 8], strides = [1, 1, 1]} : vector<2x8x32xf32> to vector<2x8x8xf32>
    %143 = vector.extract_strided_slice %124 {offsets = [0, 0, 8], sizes = [2, 8, 8], strides = [1, 1, 1]} : vector<2x8x32xf32> to vector<2x8x8xf32>
    "tpu.trace_start"() <{level = 10 : i32, message = "bqd,bkd->bqk"}> : () -> ()
    %cst_57 = arith.constant dense<0.000000e+00> : vector<2x8x8xf32>
    %144 = tpu.matmul %141, %142, %cst_57 {dimension_numbers = #tpu.dot_dimension_numbers<[2], [2], [1], [1], [0, 0, 0, 1, 1, 1], [0], [0]>} : vector<2x8x8xf32>, vector<2x8x8xf32>, vector<2x8x8xf32> -> vector<2x8x8xf32>
    "tpu.trace_stop"() : () -> ()
    %145 = arith.addf %144, %121 : vector<2x8x8xf32>
    %cst_58 = arith.constant dense<0xFF800000> : vector<2x8xf32>
    %146 = vector.multi_reduction <maximumf>, %145, %cst_58 [2] : vector<2x8x8xf32> to vector<2x8xf32>
    %147 = vector.shape_cast %146 : vector<2x8xf32> to vector<2x8x1xf32>
    %148 = vector.broadcast %147 : vector<2x8x1xf32> to vector<2x8x8xf32>
    %149 = arith.subf %145, %148 : vector<2x8x8xf32>
    %150 = math.exp %149 : vector<2x8x8xf32>
    %cst_59 = arith.constant dense<0.000000e+00> : vector<2x8xf32>
    %151 = vector.multi_reduction <add>, %150, %cst_59 [2] : vector<2x8x8xf32> to vector<2x8xf32>
    %152 = vector.shape_cast %151 : vector<2x8xf32> to vector<2x8x1xf32>
    %153 = tpu.reciprocal %152 {approx = true} : vector<2x8x1xf32> -> vector<2x8x1xf32>
    %154 = vector.broadcast %153 : vector<2x8x1xf32> to vector<2x8x8xf32>
    %155 = arith.mulf %150, %154 : vector<2x8x8xf32>
    "tpu.trace_start"() <{level = 10 : i32, message = "bqk,bkd->bqd"}> : () -> ()
    %cst_60 = arith.constant dense<0.000000e+00> : vector<2x8x8xf32>
    %156 = tpu.matmul %155, %143, %cst_60 {dimension_numbers = #tpu.dot_dimension_numbers<[2], [1], [1], [2], [0, 0, 0, 1, 1, 2], [0], [0]>} : vector<2x8x8xf32>, vector<2x8x8xf32>, vector<2x8x8xf32> -> vector<2x8x8xf32>
    "tpu.trace_stop"() : () -> ()
    %157 = vector.extract_strided_slice %122 {offsets = [0, 0, 16], sizes = [2, 8, 8], strides = [1, 1, 1]} : vector<2x8x32xf32> to vector<2x8x8xf32>
    %158 = vector.extract_strided_slice %123 {offsets = [0, 0, 16], sizes = [2, 8, 8], strides = [1, 1, 1]} : vector<2x8x32xf32> to vector<2x8x8xf32>
    %159 = vector.extract_strided_slice %124 {offsets = [0, 0, 16], sizes = [2, 8, 8], strides = [1, 1, 1]} : vector<2x8x32xf32> to vector<2x8x8xf32>
    "tpu.trace_start"() <{level = 10 : i32, message = "bqd,bkd->bqk"}> : () -> ()
    %cst_61 = arith.constant dense<0.000000e+00> : vector<2x8x8xf32>
    %160 = tpu.matmul %157, %158, %cst_61 {dimension_numbers = #tpu.dot_dimension_numbers<[2], [2], [1], [1], [0, 0, 0, 1, 1, 1], [0], [0]>} : vector<2x8x8xf32>, vector<2x8x8xf32>, vector<2x8x8xf32> -> vector<2x8x8xf32>
    "tpu.trace_stop"() : () -> ()
    %161 = arith.addf %160, %121 : vector<2x8x8xf32>
    %cst_62 = arith.constant dense<0xFF800000> : vector<2x8xf32>
    %162 = vector.multi_reduction <maximumf>, %161, %cst_62 [2] : vector<2x8x8xf32> to vector<2x8xf32>
    %163 = vector.shape_cast %162 : vector<2x8xf32> to vector<2x8x1xf32>
    %164 = vector.broadcast %163 : vector<2x8x1xf32> to vector<2x8x8xf32>
    %165 = arith.subf %161, %164 : vector<2x8x8xf32>
    %166 = math.exp %165 : vector<2x8x8xf32>
    %cst_63 = arith.constant dense<0.000000e+00> : vector<2x8xf32>
    %167 = vector.multi_reduction <add>, %166, %cst_63 [2] : vector<2x8x8xf32> to vector<2x8xf32>
    %168 = vector.shape_cast %167 : vector<2x8xf32> to vector<2x8x1xf32>
    %169 = tpu.reciprocal %168 {approx = true} : vector<2x8x1xf32> -> vector<2x8x1xf32>
    %170 = vector.broadcast %169 : vector<2x8x1xf32> to vector<2x8x8xf32>
    %171 = arith.mulf %166, %170 : vector<2x8x8xf32>
    "tpu.trace_start"() <{level = 10 : i32, message = "bqk,bkd->bqd"}> : () -> ()
    %cst_64 = arith.constant dense<0.000000e+00> : vector<2x8x8xf32>
    %172 = tpu.matmul %171, %159, %cst_64 {dimension_numbers = #tpu.dot_dimension_numbers<[2], [1], [1], [2], [0, 0, 0, 1, 1, 2], [0], [0]>} : vector<2x8x8xf32>, vector<2x8x8xf32>, vector<2x8x8xf32> -> vector<2x8x8xf32>
    "tpu.trace_stop"() : () -> ()
    %173 = vector.extract_strided_slice %122 {offsets = [0, 0, 24], sizes = [2, 8, 8], strides = [1, 1, 1]} : vector<2x8x32xf32> to vector<2x8x8xf32>
    %174 = vector.extract_strided_slice %123 {offsets = [0, 0, 24], sizes = [2, 8, 8], strides = [1, 1, 1]} : vector<2x8x32xf32> to vector<2x8x8xf32>
    %175 = vector.extract_strided_slice %124 {offsets = [0, 0, 24], sizes = [2, 8, 8], strides = [1, 1, 1]} : vector<2x8x32xf32> to vector<2x8x8xf32>
    "tpu.trace_start"() <{level = 10 : i32, message = "bqd,bkd->bqk"}> : () -> ()
    %cst_65 = arith.constant dense<0.000000e+00> : vector<2x8x8xf32>
    %176 = tpu.matmul %173, %174, %cst_65 {dimension_numbers = #tpu.dot_dimension_numbers<[2], [2], [1], [1], [0, 0, 0, 1, 1, 1], [0], [0]>} : vector<2x8x8xf32>, vector<2x8x8xf32>, vector<2x8x8xf32> -> vector<2x8x8xf32>
    "tpu.trace_stop"() : () -> ()
    %177 = arith.addf %176, %121 : vector<2x8x8xf32>
    %cst_66 = arith.constant dense<0xFF800000> : vector<2x8xf32>
    %178 = vector.multi_reduction <maximumf>, %177, %cst_66 [2] : vector<2x8x8xf32> to vector<2x8xf32>
    %179 = vector.shape_cast %178 : vector<2x8xf32> to vector<2x8x1xf32>
    %180 = vector.broadcast %179 : vector<2x8x1xf32> to vector<2x8x8xf32>
    %181 = arith.subf %177, %180 : vector<2x8x8xf32>
    %182 = math.exp %181 : vector<2x8x8xf32>
    %cst_67 = arith.constant dense<0.000000e+00> : vector<2x8xf32>
    %183 = vector.multi_reduction <add>, %182, %cst_67 [2] : vector<2x8x8xf32> to vector<2x8xf32>
    %184 = vector.shape_cast %183 : vector<2x8xf32> to vector<2x8x1xf32>
    %185 = tpu.reciprocal %184 {approx = true} : vector<2x8x1xf32> -> vector<2x8x1xf32>
    %186 = vector.broadcast %185 : vector<2x8x1xf32> to vector<2x8x8xf32>
    %187 = arith.mulf %182, %186 : vector<2x8x8xf32>
    "tpu.trace_start"() <{level = 10 : i32, message = "bqk,bkd->bqd"}> : () -> ()
    %cst_68 = arith.constant dense<0.000000e+00> : vector<2x8x8xf32>
    %188 = tpu.matmul %187, %175, %cst_68 {dimension_numbers = #tpu.dot_dimension_numbers<[2], [1], [1], [2], [0, 0, 0, 1, 1, 2], [0], [0]>} : vector<2x8x8xf32>, vector<2x8x8xf32>, vector<2x8x8xf32> -> vector<2x8x8xf32>
    "tpu.trace_stop"() : () -> ()
    %189 = tpu.concatenate %140, %156, %172, %188 in 2 : vector<2x8x8xf32>, vector<2x8x8xf32>, vector<2x8x8xf32>, vector<2x8x8xf32> -> vector<2x8x32xf32>
    %190 = vector.shape_cast %189 : vector<2x8x32xf32> to vector<16x32xf32>
    %c0_69 = arith.constant 0 : index
    %c0_70 = arith.constant 0 : index
    %191 = vector.load %arg12[%c0_69, %c0_70] : memref<32x32xf32, #tpu.memory_space<vmem>>, vector<32x32xf32>
    %cst_71 = arith.constant dense<0.000000e+00> : vector<16x32xf32>
    %192 = tpu.matmul %190, %191, %cst_71 {dimension_numbers = #tpu.dot_dimension_numbers<[1], [0], [0], [1], [0, 0, 1, 1], [], []>} : vector<16x32xf32>, vector<32x32xf32>, vector<16x32xf32> -> vector<16x32xf32>
    %c0_72 = arith.constant 0 : index
    %c0_73 = arith.constant 0 : index
    %193 = vector.load %arg13[%c0_72, %c0_73] : memref<1x32xf32, #tpu.memory_space<vmem>>, vector<1x32xf32>
    %194 = vector.broadcast %193 : vector<1x32xf32> to vector<16x32xf32>
    %195 = arith.addf %192, %194 : vector<16x32xf32>
    %c0_74 = arith.constant 0 : index
    %c0_75 = arith.constant 0 : index
    %196 = vector.load %arg20[%c0_74, %c0_75] : memref<1x32xf32, #tpu.memory_space<vmem>>, vector<1x32xf32>
    %c0_76 = arith.constant 0 : index
    %c0_77 = arith.constant 0 : index
    %197 = vector.load %arg21[%c0_76, %c0_77] : memref<1x32xf32, #tpu.memory_space<vmem>>, vector<1x32xf32>
    %198 = arith.addf %108, %195 : vector<16x32xf32>
    %cst_78 = arith.constant dense<0.000000e+00> : vector<16xf32>
    %199 = vector.multi_reduction <add>, %198, %cst_78 [1] : vector<16x32xf32> to vector<16xf32>
    %200 = vector.shape_cast %199 : vector<16xf32> to vector<16x1xf32>
    %cst_79 = arith.constant 3.200000e+01 : f32
    %201 = vector.broadcast %cst_79 : f32 to vector<16x1xf32>
    %202 = arith.divf %200, %201 : vector<16x1xf32>
    %203 = vector.broadcast %202 : vector<16x1xf32> to vector<16x32xf32>
    %204 = arith.subf %198, %203 : vector<16x32xf32>
    %205 = arith.mulf %204, %204 : vector<16x32xf32>
    %cst_80 = arith.constant dense<0.000000e+00> : vector<16xf32>
    %206 = vector.multi_reduction <add>, %205, %cst_80 [1] : vector<16x32xf32> to vector<16xf32>
    %207 = vector.shape_cast %206 : vector<16xf32> to vector<16x1xf32>
    %cst_81 = arith.constant 0.0322580636 : f32
    %208 = vector.broadcast %cst_81 : f32 to vector<16x1xf32>
    %209 = arith.mulf %207, %208 : vector<16x1xf32>
    %210 = math.sqrt %209 : vector<16x1xf32>
    %cst_82 = arith.constant 9.99999971E-10 : f32
    %211 = vector.broadcast %cst_82 : f32 to vector<16x1xf32>
    %212 = arith.addf %210, %211 : vector<16x1xf32>
    %213 = tpu.reciprocal %212 {approx = true} : vector<16x1xf32> -> vector<16x1xf32>
    %214 = vector.broadcast %213 : vector<16x1xf32> to vector<16x32xf32>
    %215 = arith.mulf %204, %214 : vector<16x32xf32>
    %216 = vector.broadcast %196 : vector<1x32xf32> to vector<16x32xf32>
    %217 = arith.mulf %216, %215 : vector<16x32xf32>
    %218 = vector.broadcast %197 : vector<1x32xf32> to vector<16x32xf32>
    %219 = arith.addf %217, %218 : vector<16x32xf32>
    %c0_83 = arith.constant 0 : index
    %c0_84 = arith.constant 0 : index
    %220 = vector.load %arg14[%c0_83, %c0_84] : memref<32x64xf32, #tpu.memory_space<vmem>>, vector<32x64xf32>
    %cst_85 = arith.constant dense<0.000000e+00> : vector<16x64xf32>
    %221 = tpu.matmul %219, %220, %cst_85 {dimension_numbers = #tpu.dot_dimension_numbers<[1], [0], [0], [1], [0, 0, 1, 1], [], []>} : vector<16x32xf32>, vector<32x64xf32>, vector<16x64xf32> -> vector<16x64xf32>
    %c0_86 = arith.constant 0 : index
    %c0_87 = arith.constant 0 : index
    %222 = vector.load %arg15[%c0_86, %c0_87] : memref<1x64xf32, #tpu.memory_space<vmem>>, vector<1x64xf32>
    %223 = vector.broadcast %222 : vector<1x64xf32> to vector<16x64xf32>
    %224 = arith.addf %221, %223 : vector<16x64xf32>
    %cst_88 = arith.constant 0.000000e+00 : f32
    %225 = vector.broadcast %cst_88 : f32 to vector<16x64xf32>
    %226 = arith.maximumf %224, %225 : vector<16x64xf32>
    %c0_89 = arith.constant 0 : index
    %c0_90 = arith.constant 0 : index
    %227 = vector.load %arg16[%c0_89, %c0_90] : memref<64x32xf32, #tpu.memory_space<vmem>>, vector<64x32xf32>
    %cst_91 = arith.constant dense<0.000000e+00> : vector<16x32xf32>
    %228 = tpu.matmul %226, %227, %cst_91 {dimension_numbers = #tpu.dot_dimension_numbers<[1], [0], [0], [1], [0, 0, 1, 1], [], []>} : vector<16x64xf32>, vector<64x32xf32>, vector<16x32xf32> -> vector<16x32xf32>
    %c0_92 = arith.constant 0 : index
    %c0_93 = arith.constant 0 : index
    %229 = vector.load %arg17[%c0_92, %c0_93] : memref<1x32xf32, #tpu.memory_space<vmem>>, vector<1x32xf32>
    %230 = vector.broadcast %229 : vector<1x32xf32> to vector<16x32xf32>
    %231 = arith.addf %228, %230 : vector<16x32xf32>
    %c0_94 = arith.constant 0 : index
    %c0_95 = arith.constant 0 : index
    %232 = vector.load %arg22[%c0_94, %c0_95] : memref<1x32xf32, #tpu.memory_space<vmem>>, vector<1x32xf32>
    %c0_96 = arith.constant 0 : index
    %c0_97 = arith.constant 0 : index
    %233 = vector.load %arg23[%c0_96, %c0_97] : memref<1x32xf32, #tpu.memory_space<vmem>>, vector<1x32xf32>
    %234 = arith.addf %219, %231 : vector<16x32xf32>
    %cst_98 = arith.constant dense<0.000000e+00> : vector<16xf32>
    %235 = vector.multi_reduction <add>, %234, %cst_98 [1] : vector<16x32xf32> to vector<16xf32>
    %236 = vector.shape_cast %235 : vector<16xf32> to vector<16x1xf32>
    %cst_99 = arith.constant 3.200000e+01 : f32
    %237 = vector.broadcast %cst_99 : f32 to vector<16x1xf32>
    %238 = arith.divf %236, %237 : vector<16x1xf32>
    %239 = vector.broadcast %238 : vector<16x1xf32> to vector<16x32xf32>
    %240 = arith.subf %234, %239 : vector<16x32xf32>
    %241 = arith.mulf %240, %240 : vector<16x32xf32>
    %cst_100 = arith.constant dense<0.000000e+00> : vector<16xf32>
    %242 = vector.multi_reduction <add>, %241, %cst_100 [1] : vector<16x32xf32> to vector<16xf32>
    %243 = vector.shape_cast %242 : vector<16xf32> to vector<16x1xf32>
    %cst_101 = arith.constant 0.0322580636 : f32
    %244 = vector.broadcast %cst_101 : f32 to vector<16x1xf32>
    %245 = arith.mulf %243, %244 : vector<16x1xf32>
    %246 = math.sqrt %245 : vector<16x1xf32>
    %cst_102 = arith.constant 9.99999971E-10 : f32
    %247 = vector.broadcast %cst_102 : f32 to vector<16x1xf32>
    %248 = arith.addf %246, %247 : vector<16x1xf32>
    %249 = tpu.reciprocal %248 {approx = true} : vector<16x1xf32> -> vector<16x1xf32>
    %250 = vector.broadcast %249 : vector<16x1xf32> to vector<16x32xf32>
    %251 = arith.mulf %240, %250 : vector<16x32xf32>
    %252 = vector.broadcast %232 : vector<1x32xf32> to vector<16x32xf32>
    %253 = arith.mulf %252, %251 : vector<16x32xf32>
    %254 = vector.broadcast %233 : vector<1x32xf32> to vector<16x32xf32>
    %255 = arith.addf %253, %254 : vector<16x32xf32>
    %c0_103 = arith.constant 0 : index
    %c0_104 = arith.constant 0 : index
    %256 = vector.load %arg24[%c0_103, %c0_104] : memref<16x32xf32, #tpu.memory_space<vmem>>, vector<16x32xf32>
    tpu.vector_store %arg24[%c0_103, %c0_104], %255 {strides = array<i32>} : memref<16x32xf32, #tpu.memory_space<vmem>>, vector<16x32xf32>,
    return
  }
}

</mosaic_0001>

<bundles_post_ra>
// kernel: tpu_custom_call.1
= control target key start
LH: loop header
LB: loop body
LE: loop exit
PB: predicated region body
PF: predicated region fallthrough
CT: control target
= control target key end

     0   :  { %s5137_s0 = inlined_call_operand.hbm [shape: f32[16,32], index: 0, kind: input, shape index: {}]   ;;  %s5138_s1 = inlined_call_operand.hbm [shape: f32[16,32], index: 1, kind: input, shape index: {}]   ;;  %s5139_s2 = inlined_call_operand.hbm [shape: f32[2,8,8], index: 2, kind: input, shape index: {}]   ;;  %s5140_s3 = inlined_call_operand.hbm [shape: f32[2,8,8], index: 3, kind: input, shape index: {}]   ;;  %s5141_s4 = inlined_call_operand.vmem [shape: f32[32,96], index: 4, kind: input, shape index: {}]   ;;  %s5142_s5 = inlined_call_operand.vmem [shape: f32[1,96], index: 5, kind: input, shape index: {}]   ;;  %s5143_s6 = inlined_call_operand.vmem [shape: f32[32,32], index: 6, kind: input, shape index: {}]   ;;  %s5144_s7 = inlined_call_operand.vmem [shape: f32[1,32], index: 7, kind: input, shape index: {}]   ;;  %s5145_s8 = inlined_call_operand.vmem [shape: f32[32,32], index: 8, kind: input, shape index: {}]   ;;  %s5146_s9 = inlined_call_operand.vmem [shape: f32[1,32], index: 9, kind: input, shape index: {}]   ;;  %s5147_s10 = inlined_call_operand.hbm [shape: f32[32,64], index: 10, kind: input, shape index: {}]   ;;  %s5148_s11 = inlined_call_operand.vmem [shape: f32[1,64], index: 11, kind: input, shape index: {}]   ;;  %s5149_s12 = inlined_call_operand.hbm [shape: f32[32,32], index: 12, kind: input, shape index: {}]   ;;  %s5150_s13 = inlined_call_operand.vmem [shape: f32[1,32], index: 13, kind: input, shape index: {}]   ;;  %s5151_s14 = inlined_call_operand.hbm [shape: f32[32,64], index: 14, kind: input, shape index: {}]   ;;  %s5152_s15 = inlined_call_operand.vmem [shape: f32[1,64], index: 15, kind: input, shape index: {}]   ;;  %s5153_s16 = inlined_call_operand.vmem [shape: f32[64,32], index: 16, kind: input, shape index: {}]   ;;  %s5154_s17 = inlined_call_operand.vmem [shape: f32[1,32], index: 17, kind: input, shape index: {}]   ;;  %s5155_s18 = inlined_call_operand.vmem [shape: f32[1,32], index: 18, kind: input, shape index: {}]   ;;  %s5156_s19 = inlined_call_operand.vmem [shape: f32[1,32], index: 19, kind: input, shape index: {}]   ;;  %s5157_s20 = inlined_call_operand.vmem [shape: f32[1,32], index: 20, kind: input, shape index: {}]   ;;  %s5158_s21 = inlined_call_operand.vmem [shape: f32[1,32], index: 21, kind: input, shape index: {}]   ;;  %s5159_s22 = inlined_call_operand.vmem [shape: f32[1,32], index: 22, kind: input, shape index: {}]   ;;  %s5160_s23 = inlined_call_operand.vmem [shape: f32[1,32], index: 23, kind: input, shape index: {}]   ;;  %s5161_s24 = inlined_call_operand.hbm [shape: f32[16,32], index: 24, kind: output, shape index: {}]  }
   0x1   :  { %5166 = sst [smem:[#allocation20_spill]] %s5137_s0 }
   0x2   :  { %5167 = sst [smem:[#allocation21_spill]] %s5138_s1 }
   0x3   :  { %5168 = sst [smem:[#allocation22_spill]] %s5139_s2 }
   0x4   :  { %5169 = sst [smem:[#allocation23_spill]] %s5140_s3 }
   0x5   :  { %5170 = sst [smem:[#allocation24_spill]] %s5141_s4 }
   0x6   :  { %5171 = sst [smem:[#allocation25_spill]] %s5142_s5 }
   0x7   :  { %5172 = sst [smem:[#allocation26_spill]] %s5143_s6 }
   0x8   :  { %5173 = sst [smem:[#allocation27_spill]] %s5144_s7 }
   0x9   :  { %5174 = sst [smem:[#allocation28_spill]] %s5145_s8 }
   0xa   :  { %29 = vsyncpa [#allocation3], 0 }
   0xb   :  { %30 = vsyncpa [#allocation6], 0 }
   0xc   :  { %31 = vsyncpa [#allocation9], 0 }
   0xd   :  { %32 = vsyncpa [#allocation12], 0 }
   0xe   :  { %33 = vsyncpa [#allocation4], 0  ;;  %s4446_s5 = smov [#allocation5]   ;;  %s4447_s27 = smov [#allocation8]  }
   0xf   :  { %s51_s26 = sshll.u32 %s4446_s5, 4  ;;  %s75_s28 = sshll.u32 %s4447_s27, 4  ;;  %s52_s26 = int_to_ptr.vmem [resolvable:$true] %s51_s26  ;;  %s76_s28 = int_to_ptr.vmem [resolvable:$true] %s75_s28 }
  0x10   :  { %s4284_s6 = scalar_lea.vmem %s52_s26, 256  ;;  %p4289_p1 = scmp.lt.s32.totalorder %s52_s26, %s52_s26 }
  0x11   :  { %p4285_p0 = scmp.ne.s32.totalorder %s52_s26, %s4284_s6  ;;  %p4290_p2 = scmp.lt.s32.totalorder %s4284_s6, %s4284_s6 }
  0x13   :  { %p4291_p3 = por %p4290_p2, %p4289_p1 }
  0x15   :  { %p4292_p4 = pnand %p4291_p3, %p4285_p0 }
  0x17   :  { %4295 = shalt.err (!%p4292_p4)
}
  0x18   :  { %s5165_s2 = smov 128   ;;  %s4449_s29 = smov 8  }
  0x19   :  { %s5175_s30 = sld [smem:[#allocation21_spill]]  ;;  %s4304_s3 = scalar_lea.vmem %s76_s28, 256 }
  0x1a   :  { %p4305_p5 = scmp.ne.s32.totalorder %s76_s28, %s4304_s3  ;;  %p4309_p6 = scmp.lt.s32.totalorder %s76_s28, %s76_s28 }
  0x1b   :  { %p4310_p7 = scmp.lt.s32.totalorder %s4304_s3, %s4304_s3 }
  0x1d   :  { %p4311_p8 = por %p4310_p7, %p4309_p6 }
  0x1f   :  { %57 = dma.hbm_to_vmem [thread:$0]  %s5175_s30, 256, %s52_s26, [#allocation6], %s5165_s2, %s5165_s2, %s4449_s29  }
  0x20   :  { %p4312_p9 = pnand %p4311_p8, %p4305_p5 }
  0x22   :  { %4315 = shalt.err (!%p4312_p9)
}
  0x23   :  { %s5176_s4 = sld [smem:[#allocation23_spill]]  ;;  %s4450_s1 = smov [#allocation11]  }
  0x24   :  { %s113_s5 = sshll.u32 %s4450_s1, 4  ;;  %s4451_s27 = smov [#allocation2]   ;;  %s114_s5 = int_to_ptr.vmem [resolvable:$true] %s113_s5 }
  0x25   :  { %s39_s6 = sshll.u32 %s4451_s27, 4  ;;  %s4324_s26 = scalar_lea.vmem %s114_s5, 512  ;;  %s40_s6 = int_to_ptr.vmem [resolvable:$true] %s39_s6 }
  0x26   :  { %p4325_p10 = scmp.ne.s32.totalorder %s114_s5, %s4324_s26  ;;  %p4329_p11 = scmp.lt.s32.totalorder %s114_s5, %s114_s5 }
  0x27   :  { %p4330_p12 = scmp.lt.s32.totalorder %s4324_s26, %s4324_s26 }
  0x29   :  { %81 = dma.hbm_to_vmem [thread:$0]  %s5176_s4, 256, %s76_s28, [#allocation9], %s5165_s2, %s5165_s2, %s4449_s29  }
  0x2a   :  { %p4331_p13 = por %p4330_p12, %p4329_p11 }
  0x2c   :  { %p4332_p0 = pnand %p4331_p13, %p4325_p10 }
  0x2e   :  { %4335 = shalt.err (!%p4332_p0)
}
  0x2f   :  { %119 = dma.hbm_to_vmem [thread:$0]  %s5149_s12, 512, %s114_s5, [#allocation12], %s5165_s2, %s5165_s2, %s4449_s29  }
  0x30   :  { %s4344_s28 = scalar_lea.vmem %s40_s6, 256  ;;  %p4349_p2 = scmp.lt.s32.totalorder %s40_s6, %s40_s6 }
  0x31   :  { %p4345_p1 = scmp.ne.s32.totalorder %s40_s6, %s4344_s28  ;;  %p4350_p3 = scmp.lt.s32.totalorder %s4344_s28, %s4344_s28 }
  0x33   :  { %p4351_p4 = por %p4350_p3, %p4349_p2 }
  0x35   :  { %p4352_p5 = pnand %p4351_p4, %p4345_p1 }
  0x37   :  { %4355 = shalt.err (!%p4352_p5)
}
  0x38   :  { %s5177_s25 = sld [smem:[#allocation20_spill]]  ;;  %s4452_s8 = smov [#allocation7]  }
  0x39   :  { %s63_s4 = sshll.u32 %s4452_s8, 4  ;;  %s4453_s1 = smov [#allocation10]   ;;  %s64_s4 = int_to_ptr.vmem [resolvable:$true] %s63_s4 }
  0x3a   :  { %s99_s27 = sshll.u32 %s4453_s1, 4  ;;  %s4364_s12 = scalar_lea.vmem %s64_s4, 256  ;;  %s100_s27 = int_to_ptr.vmem [resolvable:$true] %s99_s27 }
  0x3b   :  { %p4365_p6 = scmp.ne.s32.totalorder %s64_s4, %s4364_s12  ;;  %p4369_p7 = scmp.lt.s32.totalorder %s64_s4, %s64_s4 }
  0x3c   :  { %p4370_p8 = scmp.lt.s32.totalorder %s4364_s12, %s4364_s12 }
  0x3e   :  { %45 = dma.hbm_to_vmem [thread:$0]  %s5177_s25, 256, %s40_s6, [#allocation3], %s5165_s2, %s5165_s2, %s4449_s29  }
  0x3f   :  { %p4371_p9 = por %p4370_p8, %p4369_p7 }
  0x41   :  { %p4372_p10 = pnand %p4371_p9, %p4365_p6 }
  0x43   :  { %4375 = shalt.err (!%p4372_p10)
}
  0x44   :  { %s5178_s0 = sld [smem:[#allocation22_spill]]  ;;  %s4384_s6 = scalar_lea.vmem %s100_s27, 512 }
  0x45   :  { %p4385_p11 = scmp.ne.s32.totalorder %s100_s27, %s4384_s6  ;;  %p4389_p12 = scmp.lt.s32.totalorder %s100_s27, %s100_s27 }
  0x46   :  { %p4390_p13 = scmp.lt.s32.totalorder %s4384_s6, %s4384_s6 }
  0x48   :  { %p4391_p0 = por %p4390_p13, %p4389_p12 }
  0x4a   :  { %69 = dma.hbm_to_vmem [thread:$0]  %s5178_s0, 256, %s64_s4, [#allocation6], %s5165_s2, %s5165_s2, %s4449_s29  }
  0x4b   :  { %p4392_p1 = pnand %p4391_p0, %p4385_p11 }
  0x4d   :  { %4395 = shalt.err (!%p4392_p1)
}
  0x4e   :  { %105 = dma.hbm_to_vmem [thread:$0]  %s5147_s10, 512, %s100_s27, [#allocation9], %s5165_s2, %s5165_s2, %s4449_s29  }
  0x4f   :  { %s4454_s30 = smov [#allocation13]  }
  0x50   :  { %s127_s3 = sshll.u32 %s4454_s30, 4  ;;  %s128_s3 = int_to_ptr.vmem [resolvable:$true] %s127_s3 }
  0x51   :  { %s4404_s25 = scalar_lea.vmem %s128_s3, 512  ;;  %p4409_p3 = scmp.lt.s32.totalorder %s128_s3, %s128_s3 }
  0x52   :  { %p4405_p2 = scmp.ne.s32.totalorder %s128_s3, %s4404_s25  ;;  %p4410_p4 = scmp.lt.s32.totalorder %s4404_s25, %s4404_s25 }
  0x54   :  { %p4411_p5 = por %p4410_p4, %p4409_p3 }
  0x56   :  { %p4412_p6 = pnand %p4411_p5, %p4405_p2 }
  0x58   :  { %4415 = shalt.err (!%p4412_p6)
}
  0x59   :  { %133 = dma.hbm_to_vmem [thread:$0]  %s5151_s14, 512, %s128_s3, [#allocation12], %s5165_s2, %s5165_s2, %s4449_s29  }
  0x5a   :  { %4436 = dma.done.wait [#allocation3], 256  }
  0x5b   :  { %4437 = vsyncadd [#allocation3], 4294967040 }
  0x5c   :  { %4438 = dma.done.wait [#allocation6], 512  }
  0x5d   :  { %4439 = vsyncadd [#allocation6], 4294966784 }
  0x5e   :  { %4440 = dma.done.wait [#allocation9], 768  }
  0x5f   :  { %4441 = vsyncadd [#allocation9], 4294966528 }
  0x60   :  { %4442 = dma.done.wait [#allocation12], 1024  }
  0x61   :  { %4443 = vsyncadd [#allocation12], 4294966272  ;;  %vm188_vm0 = vcmask 261120   ;;  %s5179_s27 = sld [smem:[#allocation24_spill]]  ;;  %v4644_v2 = vld [vmem:[#allocation2] sm:$0xff]  ;;  %v4654_v5 = vld [vmem:[#allocation2 + $0x8] sm:$0xff] }
  0x62   :  { %3926 = vmatprep.mubr.msk.f32.mxu1 %vm188_vm0, %v4644_v2  ;;  %v4455_v6 = vmov 0.0   ;;  %vm4456_vm1 = vmmov 0   ;;  %s5180_s30 = sld [smem:[#allocation25_spill]]  ;;  %s4457_s3 = smov 96   ;;  %vm275_vm2 = vcmask 64512   ;;  %v4687_v14 = vld [vmem:[#allocation7] sm:$0xff] }
  0x63   :  { %3939 = vmatprep.subr.mxu0 %v4455_v6  ;;  %3941 = vmatprep.mubr.msk.f32.mxu0 %vm4456_vm1, %v4455_v6  ;;  %v4690_v18 = vld [vmem:[#allocation7 + $0x8] sm:$0xff]  ;;  %s4458_s25 = smov 64   ;;  %s4459_s8 = smov 88   ;;  %vm1620_vm3 = vcmask 195584   ;;  %vm1617_vm4 = vcmask 130048   ;;  %vm3569_vm13 = vcmask 523264  }
  0x64   :  { %s4460_s4 = smov 120   ;;  %s4461_s10 = smov 56  }
  0x65   :  { %s4462_s1 = smov 80   ;;  %s4464_s12 = smov 48  }
  0x66   :  { %s4465_s5 = smov 72   ;;  %s4466_s14 = smov 104  }
  0x67   :  { %v180_v0 = vld [vmem:[%s5179_s27 + $0x18] sm:$0xff]  ;;  %v179_v1 = vld [vmem:[%s5179_s27 + $0x10] sm:$0xff]  ;;  %v178_v3 = vld [vmem:[%s5179_s27 + $0x8] sm:$0xff]  ;;  %s4467_s26 = smov 40   ;;  %s4468_s0 = smov 16  }
  0x68   :  { %3918 = vmatprep.subr.mxu1 %v180_v0  ;;  %v177_v4 = vld [vmem:[%s5179_s27] sm:$0xff]  ;;  %s4463_s27 = smov 112   ;;  %s5181_s28 = sld [smem:[#allocation26_spill]] }
  0x69   :  { %3919 = vmatpush3.msra.mxu1 %v180_v0  ;;  %v3733_v8 = vld [vmem:[%s5180_s30] ss:$0 sm:$0xff]  ;;  %s4469_s6 = smov 24  }
  0x6a   :  { %3920 = vmatprep.subr.mxu1 %v179_v1 }
  0x6b   :  { %3921 = vmatpush3.msra.mxu1 %v179_v1 }
  0x6c   :  { %3922 = vmatprep.subr.mxu1 %v178_v3 }
  0x6d   :  { %3923 = vmatpush3.msra.mxu1 %v178_v3 }
  0x6e   :  { %3924 = vmatprep.subr.mxu1 %v177_v4 }
  0x6f   :  { %3925 = vmatpush3.msra.mxu1 %v177_v4 }
  0x70   :  { %3927 = vmatmul.mubr.msk.f32.vlgmr.msra.gmra.mxu1 %vm188_vm0, %v4654_v5  ;;  %3929 = vmatprep.subr.mxu1 %v4455_v6 }
  0x71   :  { %3931 = vmatprep.mubr.msk.f32.mxu1 %vm4456_vm1, %v4455_v6 }
 0x130   :  { %v3928_v7 = vpop.f32.mrf.mxu1 }
 0x131   :  { %v4671_v11 = vadd.f32 %v3928_v7, %v3733_v8 }
 0x132   :  { %v261_v9 = vpop.f32.mrf.mxu1 }
 0x133   :  { %v4667_v10 = vadd.f32 %v3733_v8, %v261_v9 }
 0x135   :  { %273 = vrot.lane.b32.xlu0 %v4667_v10, %s4457_s3 }
 0x139   :  { %351 = vrot.lane.b32.xlu0 %v4671_v11, %s4457_s3 }
 0x1a7   :  { %v274_v12 = vpop.permute.xlu0 %273 }
 0x1a8   :  { %3930 = vmatpush3.xpose.msk.msra.mxu1 %vm275_vm2, %v274_v12 }
 0x1a9   :  { %3934 = vmatprep.subr.mxu1 %v4455_v6 }
 0x1ab   :  { %3932 = vmatmul.mubr.msk.f32.vlgmr.msra.gmra.mxu1 %vm275_vm2, %v4667_v10  ;;  %v352_v13 = vpop.permute.xlu0 %351 }
 0x1ac   :  { %3935 = vmatpush3.xpose.msk.msra.mxu1 %vm275_vm2, %v352_v13  ;;  %3936 = vmatprep.mubr.msk.f32.mxu1 %vm4456_vm1, %v4455_v6 }
 0x1ad   :  { %3944 = vmatprep.subr.mxu1 %v4455_v6 }
 0x1af   :  { %3937 = vmatmul.mubr.msk.f32.vlgmr.msra.gmra.mxu1 %vm275_vm2, %v4671_v11 }
 0x1b0   :  { %3946 = vmatprep.mubr.msk.f32.mxu1 %vm4456_vm1, %v4455_v6 }
 0x26b   :  { %v346_v15 = vpop.f32.mrf.mxu1 }
 0x26c   :  { %v347_v16 = vadd.f32 %v346_v15, %v4687_v14 }
 0x26d   :  { %v3933_v17 = vpop.f32.mrf.mxu1 }
 0x26e   :  { %v427_v19 = vsel %vm275_vm2, %v347_v16, -inf }
 0x26f   :  { %428 = vmax.xlane.f32.xlu1 %v427_v19  ;;  %v423_v20 = vpop.f32.mrf.mxu1 }
 0x270   :  { %v424_v21 = vadd.f32 %v423_v20, %v4690_v18 }
 0x271   :  { %v3938_v22 = vpop.f32.mrf.mxu1 }
 0x272   :  { %v430_v23 = vsel %vm275_vm2, %v424_v21, -inf }
 0x273   :  { %431 = vmax.xlane.f32.xlu1 %v430_v23 }
 0x284   :  { %449 = vrot.lane.b32.xlu1 %v4667_v10, %s4458_s25 }
 0x288   :  { %525 = vrot.lane.b32.xlu1 %v4671_v11, %s4458_s25 }
 0x28c   :  { %603 = vrot.lane.b32.xlu1 %v4667_v10, %s4459_s8 }
 0x290   :  { %681 = vrot.lane.b32.xlu1 %v4671_v11, %s4459_s8 }
 0x2f8   :  { %v429_v24 = vpop.xlane.xlu1 %428 }
 0x2f9   :  { %v433_v25 = vsub.f32 %v347_v16, %v429_v24 }
 0x2fb   :  { %v435_v26 = vmul.f32 1.442695, %v433_v25 }
 0x2fc   :  { %v432_v27 = vpop.xlane.xlu1 %431 }
 0x2fd   :  { %4188 = vpow2.f32 %v435_v26  ;;  %v434_v28 = vsub.f32 %v424_v21, %v432_v27 }
 0x2ff   :  { %v437_v29 = vmul.f32 1.442695, %v434_v28 }
 0x300   :  { %v450_v30 = vpop.permute.xlu1 %449 }
 0x301   :  { %4190 = vpow2.f32 %v437_v29  ;;  %3940 = vmatpush3.msra.mxu0 %v450_v30 }
 0x302   :  { %3949 = vmatprep.subr.mxu0 %v4455_v6 }
 0x304   :  { %v526_v31 = vpop.permute.xlu1 %525 }
 0x305   :  { %3945 = vmatpush3.msra.mxu1 %v526_v31 }
 0x306   :  { %3954 = vmatprep.subr.mxu1 %v4455_v6 }
 0x308   :  { %v604_v36 = vpop.permute.xlu1 %603 }
 0x30a   :  { %v4189_v32 = vpop.eup %4188 }
 0x30b   :  { %v439_v33 = vsel %vm275_vm2, %v4189_v32, 0.0 }
 0x30c   :  { %440 = vadd.xlane.f32.xlu0 %v439_v33  ;;  %v682_v37 = vpop.permute.xlu1 %681 }
 0x30e   :  { %v4191_v34 = vpop.eup %4190 }
 0x30f   :  { %v442_v35 = vsel %vm275_vm2, %v4191_v34, 0.0 }
 0x310   :  { %443 = vadd.xlane.f32.xlu1 %v442_v35 }
 0x321   :  { %679 = vrot.lane.b32.xlu1 %v4671_v11, %s4460_s4 }
 0x322   :  { %601 = vrot.lane.b32.xlu0 %v4667_v10, %s4460_s4 }
 0x395   :  { %v441_v38 = vpop.xlane.xlu0 %440 }
 0x396   :  { %4192 = vrcp.f32 %v441_v38 }
 0x399   :  { %v444_v39 = vpop.xlane.xlu1 %443  ;;  %v602_v44 = vpop.permute.xlu0 %601 }
 0x39a   :  { %4194 = vrcp.f32 %v444_v39 }
 0x39d   :  { %v680_v45 = vpop.permute.xlu1 %679 }
 0x3a3   :  { %v4193_v40 = vpop.eup %4192 }
 0x3a4   :  { %v447_v41 = vmul.f32 %v4193_v40, %v4189_v32 }
 0x3a6   :  { %3942 = vmatmul.mubr.msk.f32.vlgmr.msra.gmra.mxu0 %vm275_vm2, %v447_v41 }
 0x3a7   :  { %v4195_v42 = vpop.eup %4194  ;;  %3950 = vmatpush3.xpose.msk.msra.mxu0 %vm275_vm2, %v604_v36  ;;  %3951 = vmatprep.mubr.msk.f32.mxu0 %vm4456_vm1, %v4455_v6 }
 0x3a8   :  { %v448_v43 = vmul.f32 %v4195_v42, %v4191_v34  ;;  %3959 = vmatprep.subr.mxu0 %v4455_v6 }
 0x3aa   :  { %3947 = vmatmul.mubr.msk.f32.vlgmr.msra.gmra.mxu1 %vm275_vm2, %v448_v43  ;;  %3952 = vmatmul.mubr.msk.f32.vlgmr.msra.gmra.mxu0 %vm275_vm2, %v602_v44 }
 0x3ab   :  { %3955 = vmatpush3.xpose.msk.msra.mxu1 %vm275_vm2, %v682_v37  ;;  %3956 = vmatprep.mubr.msk.f32.mxu1 %vm4456_vm1, %v4455_v6 }
 0x3ac   :  { %3964 = vmatprep.subr.mxu1 %v4455_v6  ;;  %3961 = vmatprep.mubr.msk.f32.mxu0 %vm4456_vm1, %v4455_v6 }
 0x3ae   :  { %3957 = vmatmul.mubr.msk.f32.vlgmr.msra.gmra.mxu1 %vm275_vm2, %v680_v45 }
 0x3af   :  { %3966 = vmatprep.mubr.msk.f32.mxu1 %vm4456_vm1, %v4455_v6 }
 0x466   :  { %v4725_v46 = vpop.f32.mrf.mxu0 }
 0x468   :  { %v3943_v47 = vpop.f32.mrf.mxu0 }
 0x46a   :  { %v4727_v48 = vpop.f32.mrf.mxu1  ;;  %v675_v49 = vpop.f32.mrf.mxu0 }
 0x46b   :  { %v676_v50 = vadd.f32 %v675_v49, %v4687_v14 }
 0x46c   :  { %v3948_v51 = vpop.f32.mrf.mxu1  ;;  %v3953_v52 = vpop.f32.mrf.mxu0 }
 0x46d   :  { %v757_v53 = vsel %vm275_vm2, %v676_v50, -inf }
 0x46e   :  { %v753_v54 = vpop.f32.mrf.mxu1  ;;  %758 = vmax.xlane.f32.xlu1 %v757_v53 }
 0x46f   :  { %v754_v55 = vadd.f32 %v753_v54, %v4690_v18 }
 0x470   :  { %v3958_v56 = vpop.f32.mrf.mxu1 }
 0x471   :  { %v760_v57 = vsel %vm275_vm2, %v754_v55, -inf }
 0x472   :  { %761 = vmax.xlane.f32.xlu0 %v760_v57 }
 0x47f   :  { %779 = vrot.lane.b32.xlu1 %v4667_v10, %s4461_s10 }
 0x483   :  { %933 = vrot.lane.b32.xlu1 %v4667_v10, %s4462_s1 }
 0x487   :  { %1011 = vrot.lane.b32.xlu1 %v4671_v11, %s4462_s1 }
 0x488   :  { %855 = vrot.lane.b32.xlu0 %v4671_v11, %s4461_s10  ;;  %s5183_s10 = sld [smem:[#allocation28_spill]] }
 0x48c   :  { %931 = vrot.lane.b32.xlu0 %v4667_v10, %s4463_s27 }
 0x4f7   :  { %v759_v58 = vpop.xlane.xlu1 %758 }
 0x4f8   :  { %v763_v59 = vsub.f32 %v676_v50, %v759_v58 }
 0x4fa   :  { %v765_v60 = vmul.f32 1.442695, %v763_v59 }
 0x4fb   :  { %v780_v61 = vpop.permute.xlu1 %779  ;;  %v762_v62 = vpop.xlane.xlu0 %761 }
 0x4fc   :  { %4196 = vpow2.f32 %v765_v60  ;;  %v764_v63 = vsub.f32 %v754_v55, %v762_v62  ;;  %3960 = vmatpush3.msra.mxu0 %v780_v61 }
 0x4fd   :  { %3969 = vmatprep.subr.mxu0 %v4455_v6 }
 0x4fe   :  { %v767_v0 = vmul.f32 1.442695, %v764_v63 }
 0x4ff   :  { %v856_v1 = vpop.permute.xlu0 %855  ;;  %v934_v9 = vpop.permute.xlu1 %933 }
 0x500   :  { %4198 = vpow2.f32 %v767_v0  ;;  %3965 = vmatpush3.msra.mxu1 %v856_v1 }
 0x501   :  { %3974 = vmatprep.subr.mxu1 %v4455_v6 }
 0x503   :  { %v1012_v12 = vpop.permute.xlu1 %1011  ;;  %v932_v21 = vpop.permute.xlu0 %931 }
 0x509   :  { %v4197_v3 = vpop.eup %4196 }
 0x50a   :  { %v769_v4 = vsel %vm275_vm2, %v4197_v3, 0.0 }
 0x50b   :  { %770 = vadd.xlane.f32.xlu1 %v769_v4 }
 0x50d   :  { %v4199_v7 = vpop.eup %4198 }
 0x50e   :  { %v772_v8 = vsel %vm275_vm2, %v4199_v7, 0.0 }
 0x50f   :  { %773 = vadd.xlane.f32.xlu1 %v772_v8 }
 0x520   :  { %1009 = vrot.lane.b32.xlu1 %v4671_v11, %s4463_s27 }
 0x594   :  { %v771_v13 = vpop.xlane.xlu1 %770 }
 0x595   :  { %4200 = vrcp.f32 %v771_v13 }
 0x598   :  { %v774_v15 = vpop.xlane.xlu1 %773 }
 0x599   :  { %4202 = vrcp.f32 %v774_v15 }
 0x59c   :  { %v1010_v22 = vpop.permute.xlu1 %1009 }
 0x5a2   :  { %v4201_v16 = vpop.eup %4200 }
 0x5a3   :  { %v777_v17 = vmul.f32 %v4201_v16, %v4197_v3 }
 0x5a5   :  { %3962 = vmatmul.mubr.msk.f32.vlgmr.msra.gmra.mxu0 %vm275_vm2, %v777_v17 }
 0x5a6   :  { %v4203_v19 = vpop.eup %4202  ;;  %3970 = vmatpush3.xpose.msk.msra.mxu0 %vm275_vm2, %v934_v9  ;;  %3971 = vmatprep.mubr.msk.f32.mxu0 %vm4456_vm1, %v4455_v6 }
 0x5a7   :  { %v778_v20 = vmul.f32 %v4203_v19, %v4199_v7  ;;  %3979 = vmatprep.subr.mxu0 %v4455_v6 }
 0x5a9   :  { %3967 = vmatmul.mubr.msk.f32.vlgmr.msra.gmra.mxu1 %vm275_vm2, %v778_v20  ;;  %3972 = vmatmul.mubr.msk.f32.vlgmr.msra.gmra.mxu0 %vm275_vm2, %v932_v21 }
 0x5aa   :  { %3975 = vmatpush3.xpose.msk.msra.mxu1 %vm275_vm2, %v1012_v12  ;;  %3976 = vmatprep.mubr.msk.f32.mxu1 %vm4456_vm1, %v4455_v6 }
 0x5ab   :  { %3984 = vmatprep.subr.mxu1 %v4455_v6  ;;  %3981 = vmatprep.mubr.msk.f32.mxu0 %vm4456_vm1, %v4455_v6 }
 0x5ad   :  { %3977 = vmatmul.mubr.msk.f32.vlgmr.msra.gmra.mxu1 %vm275_vm2, %v1010_v22 }
 0x5ae   :  { %3986 = vmatprep.mubr.msk.f32.mxu1 %vm4456_vm1, %v4455_v6 }
 0x665   :  { %v4763_v23 = vpop.f32.mrf.mxu0 }
 0x667   :  { %v3963_v24 = vpop.f32.mrf.mxu0 }
 0x669   :  { %v4765_v25 = vpop.f32.mrf.mxu1  ;;  %v1005_v26 = vpop.f32.mrf.mxu0 }
 0x66a   :  { %v1006_v27 = vadd.f32 %v1005_v26, %v4687_v14 }
 0x66b   :  { %v3968_v28 = vpop.f32.mrf.mxu1  ;;  %v3973_v29 = vpop.f32.mrf.mxu0 }
 0x66c   :  { %v1087_v30 = vsel %vm275_vm2, %v1006_v27, -inf  ;;  %v1625_v29 = vld [vmem:[%s5181_s28 + $0x10] sm:$0xff] }
 0x66d   :  { %v1083_v31 = vpop.f32.mrf.mxu1  ;;  %1088 = vmax.xlane.f32.xlu0 %v1087_v30  ;;  %v1624_v30 = vld [vmem:[%s5181_s28 + $0x8] sm:$0xff] }
 0x66e   :  { %v1084_v32 = vadd.f32 %v1083_v31, %v4690_v18  ;;  %v1623_v31 = vld [vmem:[%s5181_s28] sm:$0xff] }
 0x66f   :  { %v3978_v33 = vpop.f32.mrf.mxu1 }
 0x670   :  { %v1090_v34 = vsel %vm275_vm2, %v1084_v32, -inf }
 0x671   :  { %1091 = vmax.xlane.f32.xlu1 %v1090_v34 }
 0x682   :  { %1109 = vrot.lane.b32.xlu1 %v4667_v10, %s4464_s12 }
 0x683   :  { %1185 = vrot.lane.b32.xlu0 %v4671_v11, %s4464_s12 }
 0x686   :  { %1263 = vrot.lane.b32.xlu1 %v4667_v10, %s4465_s5 }
 0x68a   :  { %1341 = vrot.lane.b32.xlu1 %v4671_v11, %s4465_s5 }
 0x68e   :  { %1339 = vrot.lane.b32.xlu1 %v4671_v11, %s4466_s14 }
 0x6f6   :  { %v1089_v35 = vpop.xlane.xlu0 %1088 }
 0x6f7   :  { %v1093_v36 = vsub.f32 %v1006_v27, %v1089_v35 }
 0x6f9   :  { %v1095_v37 = vmul.f32 1.442695, %v1093_v36 }
 0x6fa   :  { %v1092_v38 = vpop.xlane.xlu1 %1091  ;;  %v1186_v39 = vpop.permute.xlu0 %1185 }
 0x6fb   :  { %4204 = vpow2.f32 %v1095_v37  ;;  %v1094_v40 = vsub.f32 %v1084_v32, %v1092_v38  ;;  %3985 = vmatpush3.msra.mxu1 %v1186_v39 }
 0x6fc   :  { %3994 = vmatprep.subr.mxu1 %v4455_v6 }
 0x6fd   :  { %v1097_v41 = vmul.f32 1.442695, %v1094_v40 }
 0x6fe   :  { %v1110_v42 = vpop.permute.xlu1 %1109 }
 0x6ff   :  { %4206 = vpow2.f32 %v1097_v41  ;;  %3980 = vmatpush3.msra.mxu0 %v1110_v42 }
 0x700   :  { %3989 = vmatprep.subr.mxu0 %v4455_v6 }
 0x702   :  { %v1264_v51 = vpop.permute.xlu1 %1263 }
 0x706   :  { %v1342_v55 = vpop.permute.xlu1 %1341 }
 0x708   :  { %v4205_v43 = vpop.eup %4204 }
 0x709   :  { %v1099_v44 = vsel %vm275_vm2, %v4205_v43, 0.0 }
 0x70a   :  { %1100 = vadd.xlane.f32.xlu0 %v1099_v44  ;;  %v1340_v58 = vpop.permute.xlu1 %1339 }
 0x70c   :  { %v4207_v45 = vpop.eup %4206 }
 0x70d   :  { %v1102_v47 = vsel %vm275_vm2, %v4207_v45, 0.0 }
 0x70e   :  { %1103 = vadd.xlane.f32.xlu0 %v1102_v47 }
 0x724   :  { %1261 = vrot.lane.b32.xlu0 %v4667_v10, %s4466_s14 }
 0x793   :  { %v1101_v49 = vpop.xlane.xlu0 %1100 }
 0x794   :  { %4208 = vrcp.f32 %v1101_v49 }
 0x797   :  { %v1104_v50 = vpop.xlane.xlu0 %1103 }
 0x798   :  { %4210 = vrcp.f32 %v1104_v50 }
 0x79b   :  { %v1262_v57 = vpop.permute.xlu0 %1261 }
 0x7a1   :  { %v4209_v52 = vpop.eup %4208 }
 0x7a2   :  { %v1107_v53 = vmul.f32 %v4209_v52, %v4205_v43 }
 0x7a4   :  { %3982 = vmatmul.mubr.msk.f32.vlgmr.msra.gmra.mxu0 %vm275_vm2, %v1107_v53 }
 0x7a5   :  { %v4211_v54 = vpop.eup %4210  ;;  %3990 = vmatpush3.xpose.msk.msra.mxu0 %vm275_vm2, %v1264_v51  ;;  %3991 = vmatprep.mubr.msk.f32.mxu0 %vm4456_vm1, %v4455_v6 }
 0x7a6   :  { %v1108_v56 = vmul.f32 %v4211_v54, %v4207_v45  ;;  %3999 = vmatprep.subr.mxu0 %v4455_v6 }
 0x7a8   :  { %3987 = vmatmul.mubr.msk.f32.vlgmr.msra.gmra.mxu1 %vm275_vm2, %v1108_v56  ;;  %3992 = vmatmul.mubr.msk.f32.vlgmr.msra.gmra.mxu0 %vm275_vm2, %v1262_v57 }
 0x7a9   :  { %3995 = vmatpush3.xpose.msk.msra.mxu1 %vm275_vm2, %v1342_v55  ;;  %3996 = vmatprep.mubr.msk.f32.mxu1 %vm4456_vm1, %v4455_v6 }
 0x7aa   :  { %4004 = vmatprep.subr.mxu1 %v4455_v6  ;;  %4001 = vmatprep.mubr.msk.f32.mxu0 %vm4456_vm1, %v4455_v6 }
 0x7ac   :  { %3997 = vmatmul.mubr.msk.f32.vlgmr.msra.gmra.mxu1 %vm275_vm2, %v1340_v58 }
 0x7ad   :  { %4006 = vmatprep.mubr.msk.f32.mxu1 %vm4456_vm1, %v4455_v6 }
 0x864   :  { %v1181_v59 = vpop.f32.mrf.mxu0 }
 0x866   :  { %v3983_v60 = vpop.f32.mrf.mxu0 }
 0x868   :  { %v1257_v61 = vpop.f32.mrf.mxu1  ;;  %v1335_v62 = vpop.f32.mrf.mxu0 }
 0x869   :  { %v1336_v63 = vadd.f32 %v1335_v62, %v4687_v14 }
 0x86a   :  { %v3988_v0 = vpop.f32.mrf.mxu1  ;;  %v3993_v1 = vpop.f32.mrf.mxu0 }
 0x86b   :  { %v1417_v3 = vsel %vm275_vm2, %v1336_v63, -inf  ;;  %v1871_v1 = vld [vmem:[#allocation10 + $0x18] sm:$0xff] }
 0x86c   :  { %v1413_v4 = vpop.f32.mrf.mxu1  ;;  %1418 = vmax.xlane.f32.xlu0 %v1417_v3  ;;  %v1870_v3 = vld [vmem:[#allocation10 + $0x10] sm:$0xff] }
 0x86d   :  { %v1414_v7 = vadd.f32 %v1413_v4, %v4690_v18  ;;  %v1779_v4 = vld [vmem:[%s5183_s10 + $0x18] sm:$0xff] }
 0x86e   :  { %v3998_v8 = vpop.f32.mrf.mxu1 }
 0x86f   :  { %v1420_v9 = vsel %vm275_vm2, %v1414_v7, -inf  ;;  %v1869_v8 = vld [vmem:[#allocation10 + $0x8] sm:$0xff] }
 0x870   :  { %1421 = vmax.xlane.f32.xlu1 %v1420_v9  ;;  %v175_v9 = vld [vmem:[#allocation5] sm:$0xff] }
 0x881   :  { %1439 = vrot.lane.b32.xlu1 %v4667_v10, %s4467_s26 }
 0x885   :  { %1593 = vrot.lane.b32.xlu1 %v4763_v23, %s4449_s29 }
 0x889   :  { %1595 = vrot.lane.b32.xlu1 %v4765_v25, %s4449_s29 }
 0x88d   :  { %1603 = vrot.lane.b32.xlu1 %v1257_v61, %s4468_s0 }
 0x8f5   :  { %v1419_v14 = vpop.xlane.xlu0 %1418 }
 0x8f6   :  { %v1423_v12 = vsub.f32 %v1336_v63, %v1419_v14  ;;  %v1868_v14 = vld [vmem:[#allocation10] sm:$0xff] }
 0x8f8   :  { %v1425_v13 = vmul.f32 1.442695, %v1423_v12  ;;  %v1777_v12 = vld [vmem:[%s5183_s10 + $0x8] sm:$0xff] }
 0x8f9   :  { %v1422_v18 = vpop.xlane.xlu1 %1421 }
 0x8fa   :  { %4212 = vpow2.f32 %v1425_v13  ;;  %v1424_v15 = vsub.f32 %v1414_v7, %v1422_v18  ;;  %v1778_v7 = vld [vmem:[%s5183_s10 + $0x10] sm:$0xff]  ;;  %v176_v13 = vld [vmem:[#allocation5 + $0x8] sm:$0xff]  ;;  %v1776_v18 = vld [vmem:[%s5183_s10] sm:$0xff] }
 0x8fc   :  { %v1427_v16 = vmul.f32 1.442695, %v1424_v15 }
 0x8fd   :  { %v1440_v17 = vpop.permute.xlu1 %1439 }
 0x8fe   :  { %4214 = vpow2.f32 %v1427_v16  ;;  %4000 = vmatpush3.msra.mxu0 %v1440_v17 }
 0x901   :  { %v1594_v36 = vpop.permute.xlu1 %1593 }
 0x902   :  { %v1615_v39 = vsel %vm275_vm2, %v4725_v46, %v1594_v36 }
 0x905   :  { %v1596_v37 = vpop.permute.xlu1 %1595 }
 0x906   :  { %v1616_v44 = vsel %vm275_vm2, %v4727_v48, %v1596_v37 }
 0x907   :  { %v4213_v10 = vpop.eup %4212 }
 0x908   :  { %v1429_v19 = vsel %vm275_vm2, %v4213_v10, 0.0 }
 0x909   :  { %1430 = vadd.xlane.f32.xlu0 %v1429_v19  ;;  %v1604_v40 = vpop.permute.xlu1 %1603 }
 0x90a   :  { %v1619_v45 = vsel %vm1617_vm4, %v1616_v44, %v1604_v40  ;;  %v3768_v40 = vld [vmem:[%s5148_s11] ss:$0 sm:$0xff] }
 0x90b   :  { %v4215_v20 = vpop.eup %4214 }
 0x90c   :  { %v1432_v21 = vsel %vm275_vm2, %v4215_v20, 0.0 }
 0x90d   :  { %1433 = vadd.xlane.f32.xlu0 %v1432_v21 }
 0x923   :  { %1515 = vrot.lane.b32.xlu0 %v4671_v11, %s4467_s26  ;;  %v1626_v11 = vld [vmem:[%s5181_s28 + $0x18] sm:$0xff]  ;;  %s5182_s28 = sld [smem:[#allocation27_spill]] }
 0x924   :  { %4009 = vmatprep.subr.mxu0 %v1626_v11 }
 0x927   :  { %1601 = vrot.lane.b32.xlu0 %v1181_v59, %s4468_s0 }
 0x929   :  { %v3760_v46 = vld [vmem:[%s5182_s28] ss:$0 sm:$0xff] }
 0x992   :  { %v1431_v22 = vpop.xlane.xlu0 %1430 }
 0x993   :  { %4216 = vrcp.f32 %v1431_v22 }
 0x996   :  { %v1434_v23 = vpop.xlane.xlu0 %1433 }
 0x997   :  { %4218 = vrcp.f32 %v1434_v23 }
 0x99a   :  { %v1516_v24 = vpop.permute.xlu0 %1515 }
 0x99b   :  { %4005 = vmatpush3.msra.mxu1 %v1516_v24 }
 0x99c   :  { %4020 = vmatprep.subr.mxu1 %v1779_v4 }
 0x99e   :  { %v1602_v38 = vpop.permute.xlu0 %1601 }
 0x99f   :  { %v1618_v41 = vsel %vm1617_vm4, %v1615_v39, %v1602_v38 }
 0x9a0   :  { %v4217_v25 = vpop.eup %4216 }
 0x9a1   :  { %v1437_v26 = vmul.f32 %v4217_v25, %v4213_v10 }
 0x9a3   :  { %4002 = vmatmul.mubr.msk.f32.vlgmr.msra.gmra.mxu0 %vm275_vm2, %v1437_v26 }
 0x9a4   :  { %v4219_v27 = vpop.eup %4218  ;;  %4010 = vmatpush3.msra.mxu0 %v1626_v11 }
 0x9a5   :  { %v1438_v28 = vmul.f32 %v4219_v27, %v4215_v20  ;;  %4011 = vmatprep.subr.mxu0 %v1625_v29 }
 0x9a6   :  { %4012 = vmatpush3.msra.mxu0 %v1625_v29 }
 0x9a7   :  { %4007 = vmatmul.mubr.msk.f32.vlgmr.msra.gmra.mxu1 %vm275_vm2, %v1438_v28  ;;  %4013 = vmatprep.subr.mxu0 %v1624_v30 }
 0x9a8   :  { %4014 = vmatpush3.msra.mxu0 %v1624_v30  ;;  %4021 = vmatpush3.msra.mxu1 %v1779_v4 }
 0x9a9   :  { %4015 = vmatprep.subr.mxu0 %v1623_v31  ;;  %4022 = vmatprep.subr.mxu1 %v1778_v7 }
 0x9aa   :  { %4016 = vmatpush3.msra.mxu0 %v1623_v31  ;;  %4023 = vmatpush3.msra.mxu1 %v1778_v7  ;;  %v3763_v31 = vld [vmem:[%s5155_s18] ss:$0 sm:$0xff] }
 0x9ab   :  { %4031 = vmatprep.subr.mxu0 %v1871_v1  ;;  %4024 = vmatprep.subr.mxu1 %v1777_v12 }
 0x9ac   :  { %4025 = vmatpush3.msra.mxu1 %v1777_v12 }
 0x9ad   :  { %4026 = vmatprep.subr.mxu1 %v1776_v18 }
 0x9ae   :  { %4027 = vmatpush3.msra.mxu1 %v1776_v18 }
 0x9af   :  { %4042 = vmatprep.subr.mxu1 %v4455_v6 }
 0xa63   :  { %v1511_v32 = vpop.f32.mrf.mxu0 }
 0xa64   :  { %1609 = vrot.lane.b32.xlu0 %v1511_v32, %s4469_s6 }
 0xa65   :  { %v4003_v33 = vpop.f32.mrf.mxu0 }
 0xa66   :  { %v3764_v33 = vld [vmem:[%s5156_s19] ss:$0 sm:$0xff] }
 0xa67   :  { %v1587_v34 = vpop.f32.mrf.mxu1 }
 0xa68   :  { %1611 = vrot.lane.b32.xlu1 %v1587_v34, %s4469_s6 }
 0xa69   :  { %v4008_v35 = vpop.f32.mrf.mxu1 }
 0xad6   :  { %v1610_v42 = vpop.permute.xlu0 %1609 }
 0xad7   :  { %v1621_v43 = vsel %vm1620_vm3, %v1618_v41, %v1610_v42 }
 0xad8   :  { %4017 = vmatprep.mubr.msk.f32.mxu0 %vm188_vm0, %v1621_v43 }
 0xada   :  { %v1612_v47 = vpop.permute.xlu1 %1611 }
 0xadb   :  { %v1622_v49 = vsel %vm1620_vm3, %v1619_v45, %v1612_v47  ;;  %v3765_v47 = vld [vmem:[%s5146_s9] ss:$0 sm:$0xff] }
 0xadc   :  { %4018 = vmatmul.mubr.msk.f32.vlgmr.msra.gmra.mxu0 %vm188_vm0, %v1622_v49 }
 0xadd   :  { %4032 = vmatpush3.msra.mxu0 %v1871_v1  ;;  %4039 = vmatprep.mubr.msk.f32.mxu0 %vm188_vm0, %v175_v9 }
 0xade   :  { %4033 = vmatprep.subr.mxu0 %v1870_v3 }
 0xadf   :  { %4034 = vmatpush3.msra.mxu0 %v1870_v3 }
 0xae0   :  { %4035 = vmatprep.subr.mxu0 %v1869_v8 }
 0xae1   :  { %4036 = vmatpush3.msra.mxu0 %v1869_v8 }
 0xae2   :  { %4037 = vmatprep.subr.mxu0 %v1868_v14 }
 0xae3   :  { %4038 = vmatpush3.msra.mxu0 %v1868_v14 }
 0xae4   :  { %4040 = vmatmul.mubr.msk.f32.vlgmr.msra.gmra.mxu0 %vm188_vm0, %v176_v13  ;;  %4052 = vmatprep.subr.mxu0 %v4455_v6 }
 0xae5   :  { %4054 = vmatprep.mubr.msk.f32.mxu0 %vm4456_vm1, %v4455_v6 }
 0xb9c   :  { %v4019_v50 = vpop.f32.mrf.mxu0 }
 0xb9d   :  { %v1712_v51 = vadd.f32 %v4019_v50, %v3760_v46 }
 0xb9e   :  { %v1706_v52 = vpop.f32.mrf.mxu0 }
 0xb9f   :  { %v1707_v53 = vadd.f32 %v3760_v46, %v1706_v52  ;;  %v1718_v54 = vadd.f32 %v1712_v51, %v4654_v5  ;;  %v4922_v51 = vld [vmem:[#allocation8] sm:$0xff] }
 0xba1   :  { %v1722_v55 = vsel %vm188_vm0, %v1718_v54, 0.0  ;;  %v1717_v48 = vadd.f32 %v1707_v53, %v4644_v2 }
 0xba2   :  { %1723 = vadd.xlane.f32.xlu1 %v1722_v55  ;;  %v4925_v55 = vld [vmem:[#allocation8 + $0x8] sm:$0xff] }
 0xba3   :  { %v1719_v56 = vsel %vm188_vm0, %v1717_v48, 0.0 }
 0xba4   :  { %1720 = vadd.xlane.f32.xlu0 %v1719_v56  ;;  %v4041_v41 = vpop.f32.mrf.mxu0 }
 0xba5   :  { %v4897_v42 = vadd.f32 %v4041_v41, %v3768_v40 }
 0xba6   :  { %v1951_v43 = vpop.f32.mrf.mxu0 }
 0xba7   :  { %v4899_v44 = vadd.f32 %v3768_v40, %v1951_v43 }
 0xc2b   :  { %v1724_v57 = vpop.xlane.xlu1 %1723 }
 0xc2c   :  { %v1727_v58 = vmul.f32 0.03125, %v1724_v57 }
 0xc2d   :  { %v1721_v59 = vpop.xlane.xlu0 %1720 }
 0xc2e   :  { %v1726_v60 = vmul.f32 0.03125, %v1721_v59  ;;  %v4848_v61 = vsub.f32 %v1718_v54, %v1727_v58 }
 0xc30   :  { %v4850_v62 = vsub.f32 %v1717_v48, %v1726_v60  ;;  %v1731_v2 = vmul.f32 %v4848_v61, %v4848_v61 }
 0xc32   :  { %v1730_v63 = vmul.f32 %v4850_v62, %v4850_v62  ;;  %v1735_v0 = vsel %vm188_vm0, %v1731_v2, 0.0 }
 0xc34   :  { %v1732_v5 = vsel %vm188_vm0, %v1730_v63, 0.0 }
 0xc35   :  { %1733 = vadd.xlane.f32.xlu0 %v1732_v5 }
 0xc39   :  { %1736 = vadd.xlane.f32.xlu0 %v1735_v0 }
 0xcbe   :  { %v1734_v15 = vpop.xlane.xlu0 %1733 }
 0xcbf   :  { %v1738_v16 = vmul.f32 0.032258064, %v1734_v15 }
 0xcc1   :  { %4220 = vrsqrt.f32 %v1738_v16  ;;  %vm1742_vm5 = vcmp.eq.f32.partialorder %v1738_v16, inf  ;;  %v1745_v21 = vand.u32 2147483648, %v1738_v16  ;;  %vm1744_vm6 = vcmp.eq.f32.partialorder %v1738_v16, 0.0 }
 0xcc2   :  { %v1737_v17 = vpop.xlane.xlu0 %1736 }
 0xcc3   :  { %v1739_v10 = vmul.f32 0.032258064, %v1737_v17 }
 0xcc5   :  { %4222 = vrsqrt.f32 %v1739_v10  ;;  %vm1749_vm7 = vcmp.eq.f32.partialorder %v1739_v10, inf  ;;  %v1752_v27 = vand.u32 2147483648, %v1739_v10  ;;  %vm1751_vm8 = vcmp.eq.f32.partialorder %v1739_v10, 0.0 }
 0xcce   :  { %v4221_v19 = vpop.eup %4220 }
 0xccf   :  { %v1741_v20 = vmul.f32 %v4221_v19, %v1738_v16 }
 0xcd1   :  { %v1743_v22 = vsel %vm1742_vm5, %v1738_v16, %v1741_v20 }
 0xcd2   :  { %v4223_v23 = vpop.eup %4222  ;;  %v1746_v24 = vsel %vm1744_vm6, %v1745_v21, %v1743_v22 }
 0xcd3   :  { %v1754_v25 = vadd.f32 1e-09, %v1746_v24  ;;  %v1748_v26 = vmul.f32 %v4223_v23, %v1739_v10 }
 0xcd5   :  { %4224 = vrcp.f32 %v1754_v25  ;;  %v1750_v28 = vsel %vm1749_vm7, %v1739_v10, %v1748_v26 }
 0xcd6   :  { %v1753_v11 = vsel %vm1751_vm8, %v1752_v27, %v1750_v28 }
 0xcd7   :  { %v1755_v29 = vadd.f32 1e-09, %v1753_v11 }
 0xcd9   :  { %4226 = vrcp.f32 %v1755_v29 }
 0xce2   :  { %v4225_v30 = vpop.eup %4224 }
 0xce3   :  { %v1758_v32 = vmul.f32 %v4225_v30, %v4850_v62 }
 0xce5   :  { %v1766_v34 = vmul.f32 %v3763_v31, %v1758_v32 }
 0xce6   :  { %v4227_v35 = vpop.eup %4226 }
 0xce7   :  { %v1759_v36 = vmul.f32 %v4227_v35, %v4848_v61  ;;  %v4884_v37 = vadd.f32 %v3764_v33, %v1766_v34 }
 0xce9   :  { %v1767_v38 = vmul.f32 %v3763_v31, %v1759_v36  ;;  %4028 = vmatprep.mubr.msk.f32.mxu1 %vm188_vm0, %v4884_v37 }
 0xceb   :  { %v4888_v39 = vadd.f32 %v3764_v33, %v1767_v38 }
 0xced   :  { %4029 = vmatmul.mubr.msk.f32.vlgmr.msra.gmra.mxu1 %vm188_vm0, %v4888_v39 }
 0xcee   :  { %4044 = vmatprep.mubr.msk.f32.mxu1 %vm4456_vm1, %v4455_v6  ;;  %4043 = vmatpush3.xpose.msk.msra.mxu1 %vm275_vm2, %v4899_v44 }
 0xcef   :  { %4047 = vmatprep.subr.mxu1 %v4455_v6 }
 0xdad   :  { %v4030_v45 = vpop.f32.mrf.mxu1 }
 0xdae   :  { %v4915_v50 = vadd.f32 %v4030_v45, %v3765_v47 }
 0xdaf   :  { %v1859_v49 = vpop.f32.mrf.mxu1 }
 0xdb0   :  { %v4907_v46 = vadd.f32 %v3765_v47, %v1859_v49 }
 0xdb2   :  { %4045 = vmatmul.mubr.msk.f32.vlgmr.msra.gmra.mxu1 %vm275_vm2, %v4907_v46 }
 0xdb3   :  { %4048 = vmatpush3.xpose.msk.msra.mxu1 %vm275_vm2, %v4897_v42  ;;  %4049 = vmatprep.mubr.msk.f32.mxu1 %vm4456_vm1, %v4455_v6 }
 0xdb4   :  { %4057 = vmatprep.subr.mxu1 %v4455_v6 }
 0xdb6   :  { %4050 = vmatmul.mubr.msk.f32.vlgmr.msra.gmra.mxu1 %vm275_vm2, %v4915_v50 }
 0xdb7   :  { %4059 = vmatprep.mubr.msk.f32.mxu1 %vm4456_vm1, %v4455_v6 }
 0xe72   :  { %v2034_v52 = vpop.f32.mrf.mxu1 }
 0xe73   :  { %v2035_v53 = vadd.f32 %v2034_v52, %v4922_v51 }
 0xe74   :  { %v4046_v54 = vpop.f32.mrf.mxu1 }
 0xe75   :  { %v2114_v48 = vsel %vm275_vm2, %v2035_v53, -inf }
 0xe76   :  { %2115 = vmax.xlane.f32.xlu1 %v2114_v48  ;;  %v2110_v56 = vpop.f32.mrf.mxu1 }
 0xe77   :  { %v2111_v57 = vadd.f32 %v2110_v56, %v4925_v55 }
 0xe78   :  { %v4051_v58 = vpop.f32.mrf.mxu1 }
 0xe79   :  { %v2117_v59 = vsel %vm275_vm2, %v2111_v57, -inf }
 0xe7a   :  { %2118 = vmax.xlane.f32.xlu0 %v2117_v59 }
 0xe87   :  { %2136 = vrot.lane.b32.xlu1 %v4899_v44, %s4457_s3 }
 0xe8b   :  { %2290 = vrot.lane.b32.xlu1 %v4899_v44, %s4460_s4 }
 0xe8f   :  { %2368 = vrot.lane.b32.xlu1 %v4897_v42, %s4460_s4 }
 0xe90   :  { %2212 = vrot.lane.b32.xlu0 %v4897_v42, %s4457_s3  ;;  %s4470_s3 = smov [#allocation14]  }
 0xeff   :  { %v2116_v60 = vpop.xlane.xlu1 %2115 }
 0xf00   :  { %v2120_v61 = vsub.f32 %v2035_v53, %v2116_v60 }
 0xf02   :  { %v2122_v62 = vmul.f32 1.442695, %v2120_v61 }
 0xf03   :  { %v2137_v63 = vpop.permute.xlu1 %2136  ;;  %v2119_v5 = vpop.xlane.xlu0 %2118 }
 0xf04   :  { %4228 = vpow2.f32 %v2122_v62  ;;  %v2121_v2 = vsub.f32 %v2111_v57, %v2119_v5  ;;  %4053 = vmatpush3.msra.mxu0 %v2137_v63 }
 0xf05   :  { %4062 = vmatprep.subr.mxu0 %v4455_v6 }
 0xf06   :  { %v2124_v0 = vmul.f32 1.442695, %v2121_v2 }
 0xf07   :  { %v2213_v1 = vpop.permute.xlu0 %2212  ;;  %v2291_v9 = vpop.permute.xlu1 %2290 }
 0xf08   :  { %4230 = vpow2.f32 %v2124_v0  ;;  %4058 = vmatpush3.msra.mxu1 %v2213_v1 }
 0xf09   :  { %4067 = vmatprep.subr.mxu1 %v4455_v6 }
 0xf0b   :  { %v2369_v14 = vpop.permute.xlu1 %2368 }
 0xf11   :  { %v4229_v3 = vpop.eup %4228 }
 0xf12   :  { %v2126_v4 = vsel %vm275_vm2, %v4229_v3, 0.0 }
 0xf13   :  { %2127 = vadd.xlane.f32.xlu1 %v2126_v4 }
 0xf15   :  { %v4231_v7 = vpop.eup %4230 }
 0xf16   :  { %v2129_v8 = vsel %vm275_vm2, %v4231_v7, 0.0 }
 0xf17   :  { %2130 = vadd.xlane.f32.xlu0 %v2129_v8 }
 0xf24   :  { %2366 = vrot.lane.b32.xlu1 %v4915_v50, %s4460_s4 }
 0xf2d   :  { %2288 = vrot.lane.b32.xlu0 %v4907_v46, %s4460_s4 }
 0xf9c   :  { %v2128_v12 = vpop.xlane.xlu1 %2127 }
 0xf9d   :  { %4232 = vrcp.f32 %v2128_v12 }
 0xfa0   :  { %v2131_v13 = vpop.xlane.xlu0 %2130  ;;  %v2367_v19 = vpop.permute.xlu1 %2366 }
 0xfa1   :  { %4234 = vrcp.f32 %v2131_v13 }
 0xfa4   :  { %v2289_v10 = vpop.permute.xlu0 %2288 }
 0xfaa   :  { %v4233_v18 = vpop.eup %4232 }
 0xfab   :  { %v2134_v15 = vmul.f32 %v4233_v18, %v4229_v3 }
 0xfad   :  { %4055 = vmatmul.mubr.msk.f32.vlgmr.msra.gmra.mxu0 %vm275_vm2, %v2134_v15 }
 0xfae   :  { %v4235_v16 = vpop.eup %4234  ;;  %4063 = vmatpush3.xpose.msk.msra.mxu0 %vm275_vm2, %v2291_v9  ;;  %4064 = vmatprep.mubr.msk.f32.mxu0 %vm4456_vm1, %v4455_v6 }
 0xfaf   :  { %v2135_v17 = vmul.f32 %v4235_v16, %v4231_v7  ;;  %4072 = vmatprep.subr.mxu0 %v4455_v6 }
 0xfb1   :  { %4060 = vmatmul.mubr.msk.f32.vlgmr.msra.gmra.mxu1 %vm275_vm2, %v2135_v17  ;;  %4065 = vmatmul.mubr.msk.f32.vlgmr.msra.gmra.mxu0 %vm275_vm2, %v2289_v10 }
 0xfb2   :  { %4068 = vmatpush3.xpose.msk.msra.mxu1 %vm275_vm2, %v2369_v14  ;;  %4069 = vmatprep.mubr.msk.f32.mxu1 %vm4456_vm1, %v4455_v6 }
 0xfb3   :  { %4077 = vmatprep.subr.mxu1 %v4455_v6  ;;  %4074 = vmatprep.mubr.msk.f32.mxu0 %vm4456_vm1, %v4455_v6 }
 0xfb5   :  { %4070 = vmatmul.mubr.msk.f32.vlgmr.msra.gmra.mxu1 %vm275_vm2, %v2367_v19 }
 0xfb6   :  { %4079 = vmatprep.mubr.msk.f32.mxu1 %vm4456_vm1, %v4455_v6 }
0x106d   :  { %v4962_v20 = vpop.f32.mrf.mxu0 }
0x106f   :  { %v4056_v21 = vpop.f32.mrf.mxu0 }
0x1071   :  { %v4964_v22 = vpop.f32.mrf.mxu1  ;;  %v2362_v23 = vpop.f32.mrf.mxu0 }
0x1072   :  { %v2363_v24 = vadd.f32 %v2362_v23, %v4922_v51 }
0x1073   :  { %v4061_v25 = vpop.f32.mrf.mxu1  ;;  %v4066_v26 = vpop.f32.mrf.mxu0 }
0x1074   :  { %v2444_v27 = vsel %vm275_vm2, %v2363_v24, -inf }
0x1075   :  { %2445 = vmax.xlane.f32.xlu0 %v2444_v27  ;;  %v2440_v28 = vpop.f32.mrf.mxu1 }
0x1076   :  { %v2441_v11 = vadd.f32 %v2440_v28, %v4925_v55 }
0x1077   :  { %v4071_v29 = vpop.f32.mrf.mxu1 }
0x1078   :  { %v2447_v30 = vsel %vm275_vm2, %v2441_v11, -inf }
0x1079   :  { %2448 = vmax.xlane.f32.xlu1 %v2447_v30 }
0x108a   :  { %2466 = vrot.lane.b32.xlu1 %v4899_v44, %s4459_s8 }
0x108b   :  { %2542 = vrot.lane.b32.xlu0 %v4897_v42, %s4459_s8  ;;  %s3718_s8 = sshll.u32 %s4470_s3, 4  ;;  %s3719_s8 = int_to_ptr.vmem [resolvable:$true] %s3718_s8 }
0x108c   :  { %s4416_s4 = scalar_lea.vmem %s3719_s8, 256  ;;  %p4421_p8 = scmp.lt.s32.totalorder %s3719_s8, %s3719_s8 }
0x108d   :  { %p4417_p7 = scmp.ne.s32.totalorder %s3719_s8, %s4416_s4  ;;  %p4422_p9 = scmp.lt.s32.totalorder %s4416_s4, %s4416_s4 }
0x108e   :  { %2620 = vrot.lane.b32.xlu1 %v4899_v44, %s4463_s27 }
0x108f   :  { %p4423_p10 = por %p4422_p9, %p4421_p8 }
0x1091   :  { %p4424_p11 = pnand %p4423_p10, %p4417_p7 }
0x1092   :  { %2698 = vrot.lane.b32.xlu1 %v4897_v42, %s4463_s27 }
0x1096   :  { %2696 = vrot.lane.b32.xlu1 %v4915_v50, %s4463_s27 }
0x10fe   :  { %v2446_v31 = vpop.xlane.xlu0 %2445 }
0x10ff   :  { %v2450_v32 = vsub.f32 %v2363_v24, %v2446_v31 }
0x1101   :  { %v2452_v33 = vmul.f32 1.442695, %v2450_v32 }
0x1102   :  { %v2543_v34 = vpop.permute.xlu0 %2542  ;;  %v2449_v35 = vpop.xlane.xlu1 %2448 }
0x1103   :  { %4236 = vpow2.f32 %v2452_v33  ;;  %v2451_v36 = vsub.f32 %v2441_v11, %v2449_v35  ;;  %4078 = vmatpush3.msra.mxu1 %v2543_v34 }
0x1104   :  { %4087 = vmatprep.subr.mxu1 %v4455_v6 }
0x1105   :  { %v2454_v38 = vmul.f32 1.442695, %v2451_v36 }
0x1106   :  { %v2467_v40 = vpop.permute.xlu1 %2466 }
0x1107   :  { %4238 = vpow2.f32 %v2454_v38  ;;  %4073 = vmatpush3.msra.mxu0 %v2467_v40 }
0x1108   :  { %4082 = vmatprep.subr.mxu0 %v4455_v6 }
0x110a   :  { %v2621_v53 = vpop.permute.xlu1 %2620 }
0x110e   :  { %v2699_v57 = vpop.permute.xlu1 %2698 }
0x1110   :  { %v4237_v41 = vpop.eup %4236 }
0x1111   :  { %v2456_v43 = vsel %vm275_vm2, %v4237_v41, 0.0 }
0x1112   :  { %2457 = vadd.xlane.f32.xlu0 %v2456_v43  ;;  %v2697_v60 = vpop.permute.xlu1 %2696 }
0x1114   :  { %v4239_v45 = vpop.eup %4238 }
0x1115   :  { %v2459_v47 = vsel %vm275_vm2, %v4239_v45, 0.0 }
0x1116   :  { %2460 = vadd.xlane.f32.xlu0 %v2459_v47 }
0x112c   :  { %2618 = vrot.lane.b32.xlu0 %v4907_v46, %s4463_s27 }
0x119b   :  { %v2458_v49 = vpop.xlane.xlu0 %2457 }
0x119c   :  { %4240 = vrcp.f32 %v2458_v49 }
0x119f   :  { %v2461_v52 = vpop.xlane.xlu0 %2460 }
0x11a0   :  { %4242 = vrcp.f32 %v2461_v52 }
0x11a3   :  { %v2619_v59 = vpop.permute.xlu0 %2618 }
0x11a9   :  { %v4241_v54 = vpop.eup %4240 }
0x11aa   :  { %v2464_v48 = vmul.f32 %v4241_v54, %v4237_v41 }
0x11ac   :  { %4075 = vmatmul.mubr.msk.f32.vlgmr.msra.gmra.mxu0 %vm275_vm2, %v2464_v48 }
0x11ad   :  { %v4243_v56 = vpop.eup %4242  ;;  %4083 = vmatpush3.xpose.msk.msra.mxu0 %vm275_vm2, %v2621_v53  ;;  %4084 = vmatprep.mubr.msk.f32.mxu0 %vm4456_vm1, %v4455_v6 }
0x11ae   :  { %v2465_v58 = vmul.f32 %v4243_v56, %v4239_v45  ;;  %4092 = vmatprep.subr.mxu0 %v4455_v6 }
0x11b0   :  { %4080 = vmatmul.mubr.msk.f32.vlgmr.msra.gmra.mxu1 %vm275_vm2, %v2465_v58  ;;  %4085 = vmatmul.mubr.msk.f32.vlgmr.msra.gmra.mxu0 %vm275_vm2, %v2619_v59 }
0x11b1   :  { %4088 = vmatpush3.xpose.msk.msra.mxu1 %vm275_vm2, %v2699_v57  ;;  %4089 = vmatprep.mubr.msk.f32.mxu1 %vm4456_vm1, %v4455_v6 }
0x11b2   :  { %4097 = vmatprep.subr.mxu1 %v4455_v6  ;;  %4094 = vmatprep.mubr.msk.f32.mxu0 %vm4456_vm1, %v4455_v6 }
0x11b4   :  { %4090 = vmatmul.mubr.msk.f32.vlgmr.msra.gmra.mxu1 %vm275_vm2, %v2697_v60 }
0x11b5   :  { %4099 = vmatprep.mubr.msk.f32.mxu1 %vm4456_vm1, %v4455_v6 }
0x126c   :  { %v5002_v61 = vpop.f32.mrf.mxu0 }
0x126e   :  { %v4076_v62 = vpop.f32.mrf.mxu0 }
0x1270   :  { %v5004_v63 = vpop.f32.mrf.mxu1  ;;  %v2692_v5 = vpop.f32.mrf.mxu0 }
0x1271   :  { %v2693_v2 = vadd.f32 %v2692_v5, %v4922_v51 }
0x1272   :  { %v4081_v0 = vpop.f32.mrf.mxu1  ;;  %v4086_v1 = vpop.f32.mrf.mxu0 }
0x1273   :  { %v2774_v3 = vsel %vm275_vm2, %v2693_v2, -inf  ;;  %v3311_v0 = vld [vmem:[#allocation11 + $0x18] sm:$0xff]  ;;  %v3310_v1 = vld [vmem:[#allocation11 + $0x10] sm:$0xff] }
0x1274   :  { %2775 = vmax.xlane.f32.xlu0 %v2774_v3  ;;  %v2770_v4 = vpop.f32.mrf.mxu1  ;;  %v3308_v3 = vld [vmem:[#allocation11] sm:$0xff] }
0x1275   :  { %v2771_v7 = vadd.f32 %v2770_v4, %v4925_v55 }
0x1276   :  { %v4091_v8 = vpop.f32.mrf.mxu1 }
0x1277   :  { %v2777_v9 = vsel %vm275_vm2, %v2771_v7, -inf }
0x1278   :  { %2778 = vmax.xlane.f32.xlu1 %v2777_v9 }
0x1289   :  { %2796 = vrot.lane.b32.xlu1 %v4899_v44, %s4462_s1 }
0x128a   :  { %2872 = vrot.lane.b32.xlu0 %v4897_v42, %s4462_s1 }
0x128d   :  { %2950 = vrot.lane.b32.xlu1 %v4899_v44, %s4466_s14 }
0x1291   :  { %3028 = vrot.lane.b32.xlu1 %v4897_v42, %s4466_s14 }
0x1295   :  { %3026 = vrot.lane.b32.xlu1 %v4915_v50, %s4466_s14 }
0x12fd   :  { %v2776_v14 = vpop.xlane.xlu0 %2775 }
0x12fe   :  { %v2780_v12 = vsub.f32 %v2693_v2, %v2776_v14 }
0x1300   :  { %v2782_v13 = vmul.f32 1.442695, %v2780_v12 }
0x1301   :  { %v2873_v18 = vpop.permute.xlu0 %2872  ;;  %v2779_v15 = vpop.xlane.xlu1 %2778 }
0x1302   :  { %4244 = vpow2.f32 %v2782_v13  ;;  %v2781_v16 = vsub.f32 %v2771_v7, %v2779_v15  ;;  %4098 = vmatpush3.msra.mxu1 %v2873_v18 }
0x1303   :  { %4107 = vmatprep.subr.mxu1 %v4455_v6 }
0x1304   :  { %v2784_v17 = vmul.f32 1.442695, %v2781_v16 }
0x1305   :  { %v2797_v10 = vpop.permute.xlu1 %2796 }
0x1306   :  { %4246 = vpow2.f32 %v2784_v17  ;;  %4093 = vmatpush3.msra.mxu0 %v2797_v10 }
0x1307   :  { %4102 = vmatprep.subr.mxu0 %v4455_v6 }
0x1309   :  { %v2951_v26 = vpop.permute.xlu1 %2950 }
0x130d   :  { %v3029_v29 = vpop.permute.xlu1 %3028 }
0x130f   :  { %v4245_v19 = vpop.eup %4244 }
0x1310   :  { %v2786_v21 = vsel %vm275_vm2, %v4245_v19, 0.0 }
0x1311   :  { %2787 = vadd.xlane.f32.xlu0 %v2786_v21  ;;  %v3027_v31 = vpop.permute.xlu1 %3026 }
0x1313   :  { %v4247_v50 = vpop.eup %4246 }
0x1314   :  { %v2789_v23 = vsel %vm275_vm2, %v4247_v50, 0.0 }
0x1315   :  { %2790 = vadd.xlane.f32.xlu0 %v2789_v23 }
0x132b   :  { %2948 = vrot.lane.b32.xlu0 %v4907_v46, %s4466_s14 }
0x139a   :  { %v2788_v24 = vpop.xlane.xlu0 %2787 }
0x139b   :  { %4248 = vrcp.f32 %v2788_v24 }
0x139e   :  { %v2791_v25 = vpop.xlane.xlu0 %2790 }
0x139f   :  { %4250 = vrcp.f32 %v2791_v25 }
0x13a2   :  { %v2949_v46 = vpop.permute.xlu0 %2948 }
0x13a8   :  { %v4249_v27 = vpop.eup %4248 }
0x13a9   :  { %v2794_v28 = vmul.f32 %v4249_v27, %v4245_v19 }
0x13ab   :  { %4095 = vmatmul.mubr.msk.f32.vlgmr.msra.gmra.mxu0 %vm275_vm2, %v2794_v28 }
0x13ac   :  { %v4251_v11 = vpop.eup %4250  ;;  %4103 = vmatpush3.xpose.msk.msra.mxu0 %vm275_vm2, %v2951_v26  ;;  %4104 = vmatprep.mubr.msk.f32.mxu0 %vm4456_vm1, %v4455_v6 }
0x13ad   :  { %v2795_v30 = vmul.f32 %v4251_v11, %v4247_v50  ;;  %4112 = vmatprep.subr.mxu0 %v4455_v6 }
0x13af   :  { %4100 = vmatmul.mubr.msk.f32.vlgmr.msra.gmra.mxu1 %vm275_vm2, %v2795_v30  ;;  %4105 = vmatmul.mubr.msk.f32.vlgmr.msra.gmra.mxu0 %vm275_vm2, %v2949_v46 }
0x13b0   :  { %4108 = vmatpush3.xpose.msk.msra.mxu1 %vm275_vm2, %v3029_v29  ;;  %4109 = vmatprep.mubr.msk.f32.mxu1 %vm4456_vm1, %v4455_v6 }
0x13b1   :  { %4117 = vmatprep.subr.mxu1 %v4455_v6  ;;  %4114 = vmatprep.mubr.msk.f32.mxu0 %vm4456_vm1, %v4455_v6 }
0x13b3   :  { %4110 = vmatmul.mubr.msk.f32.vlgmr.msra.gmra.mxu1 %vm275_vm2, %v3027_v31 }
0x13b4   :  { %4119 = vmatprep.mubr.msk.f32.mxu1 %vm4456_vm1, %v4455_v6 }
0x146b   :  { %v2868_v32 = vpop.f32.mrf.mxu0 }
0x146d   :  { %v4096_v33 = vpop.f32.mrf.mxu0 }
0x146f   :  { %v2944_v34 = vpop.f32.mrf.mxu1  ;;  %v3022_v35 = vpop.f32.mrf.mxu0 }
0x1470   :  { %v3023_v36 = vadd.f32 %v3022_v35, %v4922_v51 }
0x1471   :  { %v4101_v38 = vpop.f32.mrf.mxu1  ;;  %v4106_v40 = vpop.f32.mrf.mxu0 }
0x1472   :  { %v3104_v41 = vsel %vm275_vm2, %v3023_v36, -inf  ;;  %v3463_v40 = vld [vmem:[#allocation13 + $0x18] sm:$0xff] }
0x1473   :  { %3105 = vmax.xlane.f32.xlu0 %v3104_v41  ;;  %v3100_v43 = vpop.f32.mrf.mxu1  ;;  %v3461_v41 = vld [vmem:[#allocation13 + $0x8] sm:$0xff] }
0x1474   :  { %v3101_v45 = vadd.f32 %v3100_v43, %v4925_v55  ;;  %v3460_v43 = vld [vmem:[#allocation13] sm:$0xff] }
0x1475   :  { %v4111_v47 = vpop.f32.mrf.mxu1 }
0x1476   :  { %v3107_v49 = vsel %vm275_vm2, %v3101_v45, -inf  ;;  %v3560_v47 = vld [vmem:[%s5153_s16 + $0x30] sm:$0xff] }
0x1477   :  { %3108 = vmax.xlane.f32.xlu1 %v3107_v49  ;;  %v3559_v49 = vld [vmem:[%s5153_s16 + $0x28] sm:$0xff] }
0x1488   :  { %3126 = vrot.lane.b32.xlu1 %v4899_v44, %s4465_s5 }
0x148c   :  { %3280 = vrot.lane.b32.xlu1 %v5002_v61, %s4449_s29 }
0x1490   :  { %3282 = vrot.lane.b32.xlu1 %v5004_v63, %s4449_s29 }
0x1494   :  { %3290 = vrot.lane.b32.xlu1 %v2944_v34, %s4468_s0 }
0x14fc   :  { %v3106_v6 = vpop.xlane.xlu0 %3105 }
0x14fd   :  { %v3110_v51 = vsub.f32 %v3023_v36, %v3106_v6  ;;  %v3558_v6 = vld [vmem:[%s5153_s16 + $0x20] sm:$0xff] }
0x14ff   :  { %v3112_v52 = vmul.f32 1.442695, %v3110_v51 }
0x1500   :  { %v3109_v53 = vpop.xlane.xlu1 %3108 }
0x1501   :  { %4252 = vpow2.f32 %v3112_v52  ;;  %v3111_v55 = vsub.f32 %v3101_v45, %v3109_v53  ;;  %v3561_v45 = vld [vmem:[%s5153_s16 + $0x38] sm:$0xff] }
0x1503   :  { %v3114_v54 = vmul.f32 1.442695, %v3111_v55 }
0x1504   :  { %v3127_v48 = vpop.permute.xlu1 %3126 }
0x1505   :  { %4254 = vpow2.f32 %v3114_v54  ;;  %4113 = vmatpush3.msra.mxu0 %v3127_v48 }
0x1506   :  { %4122 = vmatprep.subr.mxu0 %v3311_v0 }
0x1508   :  { %v3281_v14 = vpop.permute.xlu1 %3280 }
0x1509   :  { %v3302_v18 = vsel %vm275_vm2, %v4962_v20, %v3281_v14  ;;  %v3795_v20 = vld [vmem:[%s5150_s13] ss:$0 sm:$0xff] }
0x150c   :  { %v3283_v12 = vpop.permute.xlu1 %3282 }
0x150d   :  { %v3303_v19 = vsel %vm275_vm2, %v4964_v22, %v3283_v12  ;;  %v3557_v12 = vld [vmem:[%s5153_s16 + $0x18] sm:$0xff] }
0x150e   :  { %v4253_v56 = vpop.eup %4252 }
0x150f   :  { %v3116_v44 = vsel %vm275_vm2, %v4253_v56, 0.0 }
0x1510   :  { %3117 = vadd.xlane.f32.xlu0 %v3116_v44  ;;  %v3291_v15 = vpop.permute.xlu1 %3290 }
0x1511   :  { %v3305_v21 = vsel %vm1617_vm4, %v3303_v19, %v3291_v15  ;;  %v3554_v15 = vld [vmem:[%s5153_s16] sm:$0xff] }
0x1512   :  { %v4255_v57 = vpop.eup %4254 }
0x1513   :  { %v3119_v58 = vsel %vm275_vm2, %v4255_v57, 0.0 }
0x1514   :  { %3120 = vadd.xlane.f32.xlu0 %v3119_v58 }
0x152a   :  { %3202 = vrot.lane.b32.xlu0 %v4897_v42, %s4465_s5  ;;  %v3309_v42 = vld [vmem:[#allocation11 + $0x8] sm:$0xff] }
0x152e   :  { %3288 = vrot.lane.b32.xlu0 %v2868_v32, %s4468_s0 }
0x1599   :  { %v3118_v59 = vpop.xlane.xlu0 %3117 }
0x159a   :  { %4256 = vrcp.f32 %v3118_v59 }
0x159d   :  { %v3121_v60 = vpop.xlane.xlu0 %3120 }
0x159e   :  { %4258 = vrcp.f32 %v3121_v60 }
0x15a1   :  { %v3203_v61 = vpop.permute.xlu0 %3202 }
0x15a2   :  { %4118 = vmatpush3.msra.mxu1 %v3203_v61 }
0x15a3   :  { %4133 = vmatprep.subr.mxu1 %v3463_v40 }
0x15a5   :  { %v3289_v13 = vpop.permute.xlu0 %3288 }
0x15a6   :  { %v3304_v16 = vsel %vm1617_vm4, %v3302_v18, %v3289_v13  ;;  %v3556_v13 = vld [vmem:[%s5153_s16 + $0x10] sm:$0xff]  ;;  %v3555_v18 = vld [vmem:[%s5153_s16 + $0x8] sm:$0xff] }
0x15a7   :  { %v4257_v62 = vpop.eup %4256 }
0x15a8   :  { %v3124_v63 = vmul.f32 %v4257_v62, %v4253_v56 }
0x15aa   :  { %4115 = vmatmul.mubr.msk.f32.vlgmr.msra.gmra.mxu0 %vm275_vm2, %v3124_v63 }
0x15ab   :  { %v4259_v5 = vpop.eup %4258  ;;  %4123 = vmatpush3.msra.mxu0 %v3311_v0  ;;  %v3798_v0 = vld [vmem:[%s5157_s20] ss:$0 sm:$0xff] }
0x15ac   :  { %v3125_v2 = vmul.f32 %v4259_v5, %v4255_v57  ;;  %4124 = vmatprep.subr.mxu0 %v3310_v1 }
0x15ad   :  { %4125 = vmatpush3.msra.mxu0 %v3310_v1 }
0x15ae   :  { %4120 = vmatmul.mubr.msk.f32.vlgmr.msra.gmra.mxu1 %vm275_vm2, %v3125_v2  ;;  %4126 = vmatprep.subr.mxu0 %v3309_v42 }
0x15af   :  { %4127 = vmatpush3.msra.mxu0 %v3309_v42  ;;  %4134 = vmatpush3.msra.mxu1 %v3463_v40  ;;  %v3799_v42 = vld [vmem:[%s5158_s21] ss:$0 sm:$0xff] }
0x15b0   :  { %4128 = vmatprep.subr.mxu0 %v3308_v3 }
0x15b1   :  { %4129 = vmatpush3.msra.mxu0 %v3308_v3 }
0x15b2   :  { %4144 = vmatprep.subr.mxu0 %v3561_v45 }
0x166a   :  { %v3198_v4 = vpop.f32.mrf.mxu0 }
0x166b   :  { %3296 = vrot.lane.b32.xlu0 %v3198_v4, %s4469_s6 }
0x166c   :  { %v4116_v7 = vpop.f32.mrf.mxu0 }
0x166e   :  { %v3274_v8 = vpop.f32.mrf.mxu1 }
0x166f   :  { %3298 = vrot.lane.b32.xlu1 %v3274_v8, %s4469_s6 }
0x1670   :  { %v4121_v9 = vpop.f32.mrf.mxu1 }
0x16dd   :  { %v3297_v17 = vpop.permute.xlu0 %3296 }
0x16de   :  { %v3306_v10 = vsel %vm1620_vm3, %v3304_v16, %v3297_v17  ;;  %v3800_v16 = vld [vmem:[%s5152_s15] ss:$0 sm:$0xff] }
0x16df   :  { %4130 = vmatprep.mubr.msk.f32.mxu0 %vm188_vm0, %v3306_v10 }
0x16e1   :  { %v3299_v50 = vpop.permute.xlu1 %3298 }
0x16e2   :  { %v3307_v23 = vsel %vm1620_vm3, %v3305_v21, %v3299_v50 }
0x16e3   :  { %4131 = vmatmul.mubr.msk.f32.vlgmr.msra.gmra.mxu0 %vm188_vm0, %v3307_v23 }
0x16e4   :  { %4145 = vmatpush3.msra.mxu0 %v3561_v45 }
0x16e5   :  { %4146 = vmatprep.subr.mxu0 %v3560_v47 }
0x16e6   :  { %4147 = vmatpush3.msra.mxu0 %v3560_v47 }
0x16e7   :  { %4148 = vmatprep.subr.mxu0 %v3559_v49 }
0x16e8   :  { %4149 = vmatpush3.msra.mxu0 %v3559_v49 }
0x16e9   :  { %4150 = vmatprep.subr.mxu0 %v3558_v6 }
0x16ea   :  { %4151 = vmatpush3.msra.mxu0 %v3558_v6 }
0x16eb   :  { %4152 = vmatprep.subr.mxu0 %v3557_v12 }
0x16ec   :  { %4153 = vmatpush3.msra.mxu0 %v3557_v12 }
0x16ed   :  { %4154 = vmatprep.subr.mxu0 %v3556_v13 }
0x16ee   :  { %4155 = vmatpush3.msra.mxu0 %v3556_v13 }
0x16ef   :  { %4156 = vmatprep.subr.mxu0 %v3555_v18 }
0x16f0   :  { %4157 = vmatpush3.msra.mxu0 %v3555_v18 }
0x16f1   :  { %4158 = vmatprep.subr.mxu0 %v3554_v15 }
0x16f2   :  { %4159 = vmatpush3.msra.mxu0 %v3554_v15 }
0x17a3   :  { %v4132_v24 = vpop.f32.mrf.mxu0 }
0x17a4   :  { %v3397_v25 = vadd.f32 %v4132_v24, %v3795_v20 }
0x17a5   :  { %v3391_v26 = vpop.f32.mrf.mxu0 }
0x17a6   :  { %v3403_v27 = vadd.f32 %v3397_v25, %v4888_v39  ;;  %v3392_v28 = vadd.f32 %v3795_v20, %v3391_v26  ;;  %v3803_v20 = vld [vmem:[%s5154_s17] ss:$0 sm:$0xff] }
0x17a8   :  { %v3407_v11 = vsel %vm188_vm0, %v3403_v27, 0.0  ;;  %v3402_v22 = vadd.f32 %v3392_v28, %v4884_v37  ;;  %v3462_v37 = vld [vmem:[#allocation13 + $0x10] sm:$0xff] }
0x17a9   :  { %3408 = vadd.xlane.f32.xlu1 %v3407_v11  ;;  %4135 = vmatprep.subr.mxu1 %v3462_v37 }
0x17aa   :  { %v3404_v29 = vsel %vm188_vm0, %v3402_v22, 0.0  ;;  %4136 = vmatpush3.msra.mxu1 %v3462_v37 }
0x17ab   :  { %3405 = vadd.xlane.f32.xlu0 %v3404_v29  ;;  %4137 = vmatprep.subr.mxu1 %v3461_v41 }
0x17ac   :  { %4138 = vmatpush3.msra.mxu1 %v3461_v41 }
0x17ad   :  { %4139 = vmatprep.subr.mxu1 %v3460_v43 }
0x17ae   :  { %4140 = vmatpush3.msra.mxu1 %v3460_v43 }
0x1832   :  { %v3409_v30 = vpop.xlane.xlu1 %3408 }
0x1833   :  { %v3411_v46 = vmul.f32 0.03125, %v3409_v30 }
0x1834   :  { %v3406_v31 = vpop.xlane.xlu0 %3405 }
0x1835   :  { %v3410_v32 = vmul.f32 0.03125, %v3406_v31  ;;  %v3413_v33 = vsub.f32 %v3403_v27, %v3411_v46 }
0x1837   :  { %v3412_v34 = vsub.f32 %v3402_v22, %v3410_v32  ;;  %v3415_v38 = vmul.f32 %v3413_v33, %v3413_v33 }
0x1839   :  { %v3414_v35 = vmul.f32 %v3412_v34, %v3412_v34  ;;  %v3419_v39 = vsel %vm188_vm0, %v3415_v38, 0.0 }
0x183b   :  { %v3416_v36 = vsel %vm188_vm0, %v3414_v35, 0.0 }
0x183c   :  { %3417 = vadd.xlane.f32.xlu0 %v3416_v36 }
0x1840   :  { %3420 = vadd.xlane.f32.xlu0 %v3419_v39 }
0x18c5   :  { %v3418_v51 = vpop.xlane.xlu0 %3417 }
0x18c6   :  { %v3422_v52 = vmul.f32 0.032258064, %v3418_v51 }
0x18c8   :  { %4260 = vrsqrt.f32 %v3422_v52  ;;  %vm3426_vm9 = vcmp.eq.f32.partialorder %v3422_v52, inf  ;;  %v3429_v56 = vand.u32 2147483648, %v3422_v52  ;;  %vm3428_vm10 = vcmp.eq.f32.partialorder %v3422_v52, 0.0 }
0x18c9   :  { %v3421_v53 = vpop.xlane.xlu0 %3420 }
0x18ca   :  { %v3423_v55 = vmul.f32 0.032258064, %v3421_v53 }
0x18cc   :  { %4262 = vrsqrt.f32 %v3423_v55  ;;  %vm3433_vm11 = vcmp.eq.f32.partialorder %v3423_v55, inf  ;;  %v3436_v61 = vand.u32 2147483648, %v3423_v55  ;;  %vm3435_vm12 = vcmp.eq.f32.partialorder %v3423_v55, 0.0 }
0x18d5   :  { %v4261_v54 = vpop.eup %4260 }
0x18d6   :  { %v3425_v48 = vmul.f32 %v4261_v54, %v3422_v52 }
0x18d8   :  { %v3427_v44 = vsel %vm3426_vm9, %v3422_v52, %v3425_v48 }
0x18d9   :  { %v4263_v57 = vpop.eup %4262  ;;  %v3430_v58 = vsel %vm3428_vm10, %v3429_v56, %v3427_v44 }
0x18da   :  { %v3438_v59 = vadd.f32 1e-09, %v3430_v58  ;;  %v3432_v60 = vmul.f32 %v4263_v57, %v3423_v55  ;;  %v3806_v58 = vld [vmem:[%s5159_s22] ss:$0 sm:$0xff] }
0x18dc   :  { %4264 = vrcp.f32 %v3438_v59  ;;  %v3434_v62 = vsel %vm3433_vm11, %v3423_v55, %v3432_v60  ;;  %v3807_v60 = vld [vmem:[%s5160_s23] ss:$0 sm:$0xff] }
0x18dd   :  { %v3437_v63 = vsel %vm3435_vm12, %v3436_v61, %v3434_v62 }
0x18de   :  { %v3439_v5 = vadd.f32 1e-09, %v3437_v63 }
0x18e0   :  { %4266 = vrcp.f32 %v3439_v5 }
0x18e9   :  { %v4265_v2 = vpop.eup %4264 }
0x18ea   :  { %v3442_v1 = vmul.f32 %v4265_v2, %v3412_v34 }
0x18ec   :  { %v3450_v3 = vmul.f32 %v3798_v0, %v3442_v1 }
0x18ed   :  { %v4267_v4 = vpop.eup %4266 }
0x18ee   :  { %v3443_v7 = vmul.f32 %v4267_v4, %v3413_v33  ;;  %v3458_v8 = vadd.f32 %v3799_v42, %v3450_v3 }
0x18f0   :  { %v3451_v9 = vmul.f32 %v3798_v0, %v3443_v7  ;;  %4141 = vmatprep.mubr.msk.f32.mxu1 %vm188_vm0, %v3458_v8 }
0x18f2   :  { %v3459_v14 = vadd.f32 %v3799_v42, %v3451_v9 }
0x18f4   :  { %4142 = vmatmul.mubr.msk.f32.vlgmr.msra.gmra.mxu1 %vm188_vm0, %v3459_v14 }
0x19b4   :  { %v4143_v17 = vpop.f32.mrf.mxu1 }
0x19b5   :  { %v3549_v10 = vadd.f32 %v4143_v17, %v3800_v16 }
0x19b6   :  { %v3543_v19 = vpop.f32.mrf.mxu1 }
0x19b7   :  { %v3544_v21 = vadd.f32 %v3800_v16, %v3543_v19  ;;  %v3553_v23 = vmax.f32 %v3549_v10, 0.0 }
0x19b9   :  { %v3552_v50 = vmax.f32 %v3544_v21, 0.0 }
0x19bb   :  { %4160 = vmatprep.mubr.msk.f32.mxu0 %vm3569_vm13, %v3552_v50 }
0x19bc   :  { %4161 = vmatmul.mubr.msk.f32.vlgmr.msra.gmra.mxu0 %vm3569_vm13, %v3553_v23 }
0x1a7c   :  { %v4162_v24 = vpop.f32.mrf.mxu0 }
0x1a7d   :  { %v3648_v25 = vadd.f32 %v4162_v24, %v3803_v20 }
0x1a7e   :  { %v3642_v26 = vpop.f32.mrf.mxu0 }
0x1a7f   :  { %v3643_v27 = vadd.f32 %v3803_v20, %v3642_v26  ;;  %v3654_v28 = vadd.f32 %v3648_v25, %v3459_v14 }
0x1a81   :  { %v3653_v11 = vadd.f32 %v3643_v27, %v3458_v8  ;;  %v3658_v22 = vsel %vm188_vm0, %v3654_v28, 0.0 }
0x1a82   :  { %3659 = vadd.xlane.f32.xlu0 %v3658_v22 }
0x1a83   :  { %v3655_v29 = vsel %vm188_vm0, %v3653_v11, 0.0 }
0x1a84   :  { %3656 = vadd.xlane.f32.xlu1 %v3655_v29 }
0x1b0b   :  { %v3660_v30 = vpop.xlane.xlu0 %3659 }
0x1b0c   :  { %v3662_v46 = vmul.f32 0.03125, %v3660_v30 }
0x1b0d   :  { %v3657_v31 = vpop.xlane.xlu1 %3656 }
0x1b0e   :  { %v3664_v32 = vsub.f32 %v3654_v28, %v3662_v46  ;;  %v3661_v33 = vmul.f32 0.03125, %v3657_v31 }
0x1b10   :  { %v3663_v34 = vsub.f32 %v3653_v11, %v3661_v33  ;;  %v3666_v35 = vmul.f32 %v3664_v32, %v3664_v32 }
0x1b12   :  { %v3670_v36 = vsel %vm188_vm0, %v3666_v35, 0.0  ;;  %v3665_v38 = vmul.f32 %v3663_v34, %v3663_v34 }
0x1b13   :  { %3671 = vadd.xlane.f32.xlu0 %v3670_v36 }
0x1b14   :  { %v3667_v39 = vsel %vm188_vm0, %v3665_v38, 0.0 }
0x1b15   :  { %3668 = vadd.xlane.f32.xlu1 %v3667_v39 }
0x1b9c   :  { %v3672_v40 = vpop.xlane.xlu0 %3671 }
0x1b9d   :  { %v3674_v37 = vmul.f32 0.032258064, %v3672_v40 }
0x1b9e   :  { %v3669_v41 = vpop.xlane.xlu1 %3668 }
0x1b9f   :  { %4268 = vrsqrt.f32 %v3674_v37  ;;  %v3673_v43 = vmul.f32 0.032258064, %v3669_v41  ;;  %vm3684_vm14 = vcmp.eq.f32.partialorder %v3674_v37, inf  ;;  %v3687_v49 = vand.u32 2147483648, %v3674_v37 }
0x1ba0   :  { %vm3686_vm15 = vcmp.eq.f32.partialorder %v3674_v37, 0.0 }
0x1ba1   :  { %4270 = vrsqrt.f32 %v3673_v43  ;;  %vm3677_vm1 = vcmp.eq.f32.partialorder %v3673_v43, inf  ;;  %v3680_v54 = vand.u32 2147483648, %v3673_v43  ;;  %vm3679_vm2 = vcmp.eq.f32.partialorder %v3673_v43, 0.0 }
0x1bac   :  { %v4269_v45 = vpop.eup %4268 }
0x1bad   :  { %v3683_v47 = vmul.f32 %v4269_v45, %v3674_v37 }
0x1bae   :  { %v4271_v6 = vpop.eup %4270 }
0x1baf   :  { %v3685_v51 = vsel %vm3684_vm14, %v3674_v37, %v3683_v47  ;;  %v3676_v53 = vmul.f32 %v4271_v6, %v3673_v43 }
0x1bb0   :  { %v3688_v52 = vsel %vm3686_vm15, %v3687_v49, %v3685_v51 }
0x1bb1   :  { %v3690_v55 = vadd.f32 1e-09, %v3688_v52  ;;  %v3678_v48 = vsel %vm3677_vm1, %v3673_v43, %v3676_v53 }
0x1bb2   :  { %v3681_v56 = vsel %vm3679_vm2, %v3680_v54, %v3678_v48 }
0x1bb3   :  { %4272 = vrcp.f32 %v3690_v55  ;;  %v3689_v44 = vadd.f32 1e-09, %v3681_v56 }
0x1bb5   :  { %4274 = vrcp.f32 %v3689_v44 }
0x1bc0   :  { %v4273_v57 = vpop.eup %4272 }
0x1bc1   :  { %v3694_v59 = vmul.f32 %v4273_v57, %v3664_v32 }
0x1bc2   :  { %v4275_v61 = vpop.eup %4274 }
0x1bc3   :  { %v3702_v62 = vmul.f32 %v3806_v58, %v3694_v59  ;;  %v3693_v63 = vmul.f32 %v4275_v61, %v3663_v34 }
0x1bc5   :  { %v3710_v5 = vadd.f32 %v3807_v60, %v3702_v62  ;;  %v3701_v2 = vmul.f32 %v3806_v58, %v3693_v63 }
0x1bc7   :  { %3712 = vst.msk [vmem:[#allocation14 + $0x8] sm:$0xff] %vm188_vm0, %v3710_v5  ;;  %v3709_v0 = vadd.f32 %v3807_v60, %v3701_v2 }
0x1bc9   :  { %3711 = vst.msk [vmem:[#allocation14] sm:$0xff] %vm188_vm0, %v3709_v0 }
0x1bca   :  { %4427 = shalt.err (!%p4424_p11)
}
0x1bcb   :  { %s5184_s22 = smov 128  }
0x1bcc   :  { %3724 = dma.vmem_to_hbm [thread:$0]  %s3719_s8, 256, %s5161_s24, [#allocation4], %s5184_s22, %s5184_s22, %s4449_s29  }
0x1bcd   :  { %4444 = dma.done.wait [#allocation4], 256  }
0x1bce   :  { %4445 = vsyncadd [#allocation4], 4294967040 }
0x1bcf   :  { %3728 = vsyncpa [#allocation3], 1 }
0x1bd0   :  { %3729 = vsyncpa [#allocation6], 1 }
0x1bd1   :  { %3730 = vsyncpa [#allocation9], 1 }
0x1bd2   :  { %3731 = vsyncpa [#allocation12], 1 }
0x1bd3   :  { %3732 = vsyncpa [#allocation4], 1 }

</bundles_post_ra>
